<compile_context>
chip_gen: v5e
topology: v5e:2x2
jax: 0.10.0
libtpu: 0.0.40
codegen_flags: <defaults>
</compile_context>

<pallas_src>
import functools

import jax
import jax.numpy as jnp
from jax import lax
from jax.experimental import pallas as pl
from jax.experimental.pallas import tpu as pltpu


# ----------------------------- shared math helpers -----------------------------

def _layernorm(x, w, b, eps=1e-5):
    mu = jnp.mean(x, axis=-1, keepdims=True)
    var = jnp.mean(jnp.square(x - mu), axis=-1, keepdims=True)
    return (x - mu) * lax.rsqrt(var + eps) * w + b


# ----------------------------- fused Pallas kernel -----------------------------

def _clip_kernel(x_emb_hbm,
                 ln1w_ref, ln1b_ref, wqkv_ref, bqkv_ref, wo_ref, bo_ref,
                 ln2w_ref, ln2b_ref, w1_ref, b1_ref, w2_ref, b2_ref,
                 lnfw_ref, lnfb_ref,
                 pooled_ref, x_scratch, mask_scratch, *, seq_len, nh):
    l = pl.program_id(0)
    n_layers = pl.num_programs(0)
    BS, H = x_scratch.shape
    S = seq_len
    B = BS // S
    HD = H // nh
    scale = 1.0 / float(HD) ** 0.5
    bf = jnp.bfloat16

    @pl.when(l == 0)
    def _init():
        # Residual stream init: one DMA of the embeddings; no resident HBM copy in VMEM.
        pltpu.sync_copy(x_emb_hbm, x_scratch)
        # Causal mask is layer-invariant: build once, reuse every grid step.
        row = lax.broadcasted_iota(jnp.int32, (S, S), 0)
        col = lax.broadcasted_iota(jnp.int32, (S, S), 1)
        mask_scratch[...] = jnp.where(col <= row, 0.0, -1e9).astype(jnp.float32)

    x2 = x_scratch[...]                                                  # (B*S, H) f32
    addmask = mask_scratch[...]                                          # (S, S)   f32

    # ---- LN1 + fused QKV projection (single full-width GEMM) ----
    xn = _layernorm(x2, ln1w_ref[...], ln1b_ref[...])
    qkv = jnp.dot(xn.astype(bf), wqkv_ref[...],
                  preferred_element_type=jnp.float32) + bqkv_ref[...]    # (B*S, 3H) f32
    qkvb = qkv.astype(bf)

    # ---- per-head scores / softmax / PV (batched over B), one fused out-proj ----
    heads = []
    for h in range(nh):                                  # static unrolled head loop
        qh = qkvb[:, h * HD:(h + 1) * HD].reshape(B, S, HD)
        kh = qkvb[:, H + h * HD:H + (h + 1) * HD].reshape(B, S, HD)
        vh = qkvb[:, 2 * H + h * HD:2 * H + (h + 1) * HD].reshape(B, S, HD)
        s = jnp.einsum("bqd,bkd->bqk", qh, kh,
                       preferred_element_type=jnp.float32) * scale + addmask[None]
        p = jnp.exp(s - jnp.max(s, axis=-1, keepdims=True))
        p = p * pl.reciprocal(jnp.sum(p, axis=-1, keepdims=True), approx=True)
        heads.append(jnp.einsum("bqk,bkd->bqd", p.astype(bf), vh,
                                preferred_element_type=jnp.float32))
    o = jnp.concatenate(heads, axis=-1).reshape(BS, H)                   # (B*S, NH*HD)
    attn = jnp.dot(o.astype(bf), wo_ref[...],
                   preferred_element_type=jnp.float32) + bo_ref[...]     # (B*S, H)
    x2 = x2 + attn

    # ---- LN2 + MLP (quick_gelu) ----
    xn2 = _layernorm(x2, ln2w_ref[...], ln2b_ref[...])
    h1 = jnp.dot(xn2.astype(bf), w1_ref[...],
                 preferred_element_type=jnp.float32) + b1_ref[...]       # (B*S, I)
    act = h1 * jax.nn.sigmoid(1.702 * h1)
    h2 = jnp.dot(act.astype(bf), w2_ref[...],
                 preferred_element_type=jnp.float32) + b2_ref[...]       # (B*S, H)
    x2 = x2 + h2
    x_scratch[...] = x2                                  # single residual store / layer

    # ---- final LayerNorm -> mean pool fused into the last layer step (lane-dense out) ----
    @pl.when(l == n_layers - 1)
    def _tail():
        xf = _layernorm(x2, lnfw_ref[...], lnfb_ref[...])
        pooled_ref[...] = jnp.mean(xf.reshape(B, S, H), axis=1)          # (B, H)


# ----------------------------- pallas_call wrapper -----------------------------

def _stacked_spec(per_layer_shape):
    # Leading L axis squeezed out; index_map selects layer l (double-buffered prefetch).
    zeros = (0,) * len(per_layer_shape)
    return pl.BlockSpec((None,) + tuple(per_layer_shape),
                        lambda l, zeros=zeros: (l,) + zeros)


def _const_spec(shape):
    # Full-array block, resident across the whole layer grid.
    zeros = (0,) * len(shape)
    return pl.BlockSpec(tuple(shape), lambda l, zeros=zeros: zeros)


def clip_text_to_pixel(input_ids, params, nh):
    S = input_ids.shape[1]
    # Embedding gather kept as plain-JAX glue (data-dependent gather).
    x = jnp.take(params["tok_emb"], input_ids, axis=0) + params["pos_emb"][:S][None]
    B, _, H = x.shape
    x = x.astype(jnp.float32).reshape(B * S, H)
    L, _, H3 = params["wqkv"].shape
    I = params["w1"].shape[2]

    args = (x,
            params["ln1w"], params["ln1b"], params["wqkv"], params["bqkv"],
            params["wo"], params["bo"], params["ln2w"], params["ln2b"],
            params["w1"], params["b1"], params["w2"], params["b2"],
            params["lnfw"], params["lnfb"])

    in_specs = [
        pl.BlockSpec(memory_space=pl.ANY),                  # embeddings stay in HBM
        _stacked_spec((1, H)), _stacked_spec((1, H)),       # ln1
        _stacked_spec((H, H3)), _stacked_spec((1, H3)),     # fused qkv
        _stacked_spec((H, H)), _stacked_spec((1, H)),       # out proj
        _stacked_spec((1, H)), _stacked_spec((1, H)),       # ln2
        _stacked_spec((H, I)), _stacked_spec((1, I)),       # mlp fc1
        _stacked_spec((I, H)), _stacked_spec((1, H)),       # mlp fc2
        _const_spec((1, H)), _const_spec((1, H)),           # final ln (tiny, resident)
    ]

    # Explicit VMEM budget: double-buffered per-layer weights + resident scratch, with a
    # 4x margin for intermediates.  Floor 32 MiB (safe everywhere), cap 96 MiB (fine on
    # v5e/v6e; for CLIP-L on v7x the MLP weights should be tiled instead — see TODO).
    per_layer = (2 * (H * H3 + H * H + 2 * H * I)           # bf16 weights
                 + 4 * (H3 + 3 * H + I + 4 * H))            # f32 biases + LN vectors
    resident = 4 * (2 * H + B * S * H + S * S + B * H)      # lnf + scratches + output
    vmem_limit = int(min(max(4 * (2 * per_layer + resident), 32 << 20), 96 << 20))

    pooled = pl.pallas_call(
        functools.partial(_clip_kernel, seq_len=S, nh=nh),
        out_shape=jax.ShapeDtypeStruct((B, H), jnp.float32),
        grid_spec=pltpu.PrefetchScalarGridSpec(
            num_scalar_prefetch=0,
            grid=(L,),
            in_specs=in_specs,
            out_specs=pl.BlockSpec((B, H), lambda l: (0, 0)),
            scratch_shapes=[pltpu.VMEM((B * S, H), jnp.float32),   # residual stream
                            pltpu.VMEM((S, S), jnp.float32)]),     # causal mask
        compiler_params=pltpu.CompilerParams(
            dimension_semantics=("arbitrary",),
            vmem_limit_bytes=vmem_limit),
    )(*args)

    # Tiny lane-sparse (H, 3) pixel head kept in XLA so the kernel's store stays dense.
    return jnp.dot(pooled, params["wfc"],
                   preferred_element_type=jnp.float32) + params["bfc"]


# ----------------------------- deterministic parameter init -----------------------------

def init_params(key, V, MAXPOS, H, NH, HD, I, L):
    ks = iter(jax.random.split(key, 128))

    def nrm(shape, std=0.02):
        return (std * jax.random.normal(next(ks), shape)).astype(jnp.float32)

    params = {"tok_emb": nrm((V, H)), "pos_emb": nrm((MAXPOS, H))}

    ln1w, ln1b, wqkv, bqkv, wo, bo = [], [], [], [], [], []
    ln2w, ln2b, w1, b1, w2, b2 = [], [], [], [], [], []
    for _ in range(L):
        wq_, wk_, wv_, wo_ = nrm((H, H)), nrm((H, H)), nrm((H, H)), nrm((H, H))
        bq_, bk_, bv_, bo_ = nrm((H,), .01), nrm((H,), .01), nrm((H,), .01), nrm((H,), .01)
        w1_, b1_ = nrm((I, H)), nrm((I,), .01)
        w2_, b2_ = nrm((H, I)), nrm((H,), .01)
        ln1w.append(1.0 + nrm((H,), .01)); ln1b.append(nrm((H,), .01))
        ln2w.append(1.0 + nrm((H,), .01)); ln2b.append(nrm((H,), .01))
        # PyTorch (out,in) -> input-major, fused along the output axis: (H, 3H)
        wqkv.append(jnp.concatenate([wq_.T, wk_.T, wv_.T], axis=1))
        bqkv.append(jnp.concatenate([bq_, bk_, bv_]))
        wo.append(wo_.T)                      # (NH*HD, H)
        bo.append(bo_)
        w1.append(w1_.T); b1.append(b1_)
        w2.append(w2_.T); b2.append(b2_)

    bf = jnp.bfloat16
    params.update({
        "ln1w": jnp.stack(ln1w)[:, None, :], "ln1b": jnp.stack(ln1b)[:, None, :],
        "wqkv": jnp.stack(wqkv).astype(bf),  "bqkv": jnp.stack(bqkv)[:, None, :],
        "wo": jnp.stack(wo).astype(bf),      "bo": jnp.stack(bo)[:, None, :],
        "ln2w": jnp.stack(ln2w)[:, None, :], "ln2b": jnp.stack(ln2b)[:, None, :],
        "w1": jnp.stack(w1).astype(bf),      "b1": jnp.stack(b1)[:, None, :],
        "w2": jnp.stack(w2).astype(bf),      "b2": jnp.stack(b2)[:, None, :],
    })
    params["lnfw"] = (1.0 + nrm((H,), .01)).reshape(1, H)
    params["lnfb"] = nrm((H,), .01).reshape(1, H)
    params["wfc"] = nrm((3, H)).T            # (H, 3)
    params["bfc"] = nrm((3,), .01).reshape(1, 3)
    return params


# ----------------------------- pure-JAX reference (same math & layouts) -----------------------------

def reference(input_ids, params, nh):
    S = input_ids.shape[1]
    x = jnp.take(params["tok_emb"], input_ids, axis=0) + params["pos_emb"][:S][None]
    x = x.astype(jnp.float32)
    B, _, H = x.shape
    L = params["wqkv"].shape[0]
    HD = H // nh
    scale = 1.0 / float(HD) ** 0.5
    bf = jnp.bfloat16

    row = lax.broadcasted_iota(jnp.int32, (S, S), 0)
    col = lax.broadcasted_iota(jnp.int32, (S, S), 1)
    addmask = jnp.where(col <= row, 0.0, -1e9).astype(jnp.float32)

    x2 = x.reshape(B * S, H)
    for l in range(L):
        xn = _layernorm(x2, params["ln1w"][l], params["ln1b"][l])
        qkv = jnp.dot(xn.astype(bf), params["wqkv"][l],
                      preferred_element_type=jnp.float32) + params["bqkv"][l]
        qkvb = qkv.astype(bf)
        heads = []
        for h in range(nh):
            qh = qkvb[:, h * HD:(h + 1) * HD].reshape(B, S, HD)
            kh = qkvb[:, H + h * HD:H + (h + 1) * HD].reshape(B, S, HD)
            vh = qkvb[:, 2 * H + h * HD:2 * H + (h + 1) * HD].reshape(B, S, HD)
            s = jnp.einsum("bqd,bkd->bqk", qh, kh,
                           preferred_element_type=jnp.float32) * scale + addmask[None]
            p = jax.nn.softmax(s, axis=-1)
            heads.append(jnp.einsum("bqk,bkd->bqd", p.astype(bf), vh,
                                    preferred_element_type=jnp.float32))
        o = jnp.concatenate(heads, axis=-1).reshape(B * S, H)
        attn = jnp.dot(o.astype(bf), params["wo"][l],
                       preferred_element_type=jnp.float32) + params["bo"][l]
        x2 = x2 + attn
        xn2 = _layernorm(x2, params["ln2w"][l], params["ln2b"][l])
        h1 = jnp.dot(xn2.astype(bf), params["w1"][l],
                     preferred_element_type=jnp.float32) + params["b1"][l]
        act = h1 * jax.nn.sigmoid(1.702 * h1)
        h2 = jnp.dot(act.astype(bf), params["w2"][l],
                     preferred_element_type=jnp.float32) + params["b2"][l]
        x2 = x2 + h2

    xf = _layernorm(x2, params["lnfw"], params["lnfb"])
    pooled = jnp.mean(xf.reshape(B, S, H), axis=1)
    return jnp.dot(pooled, params["wfc"],
                   preferred_element_type=jnp.float32) + params["bfc"]


# ----------------------------- main -----------------------------

if __name__ == "__main__":
    B, S = 2, 8               # batch, sequence length
    V, MAXPOS = 64, 16        # vocab size, max positions
    H, NH, HD = 32, 4, 8      # hidden, heads, head dim
    I, L = 64, 2              # MLP intermediate, num layers

    key = jax.random.PRNGKey(0)
    pkey, ikey = jax.random.split(key)
    params = init_params(pkey, V, MAXPOS, H, NH, HD, I, L)
    input_ids = jax.random.randint(ikey, (B, S), 0, V, dtype=jnp.int32)

    pixel = clip_text_to_pixel(input_ids, params, NH)
    pixel = jax.block_until_ready(pixel)

    assert pixel.shape == (B, 3), pixel.shape
    ref = reference(input_ids, params, NH)
    assert jnp.allclose(pixel, ref, atol=1e-2, rtol=1e-2), (pixel, ref)

    print("KERNEL_OK")
</pallas_src>

<mosaic_0001>
module attributes {stable_mosaic.version = 11 : i64} {
  func.func @_clip_kernel(%arg0: i32, %arg1: memref<16x32xf32, #tpu.memory_space<any>>, %arg2: memref<1x1x32xf32, #tpu.memory_space<vmem>>, %arg3: memref<1x1x32xf32, #tpu.memory_space<vmem>>, %arg4: memref<1x32x96xbf16, #tpu.memory_space<vmem>>, %arg5: memref<1x1x96xf32, #tpu.memory_space<vmem>>, %arg6: memref<1x32x32xbf16, #tpu.memory_space<vmem>>, %arg7: memref<1x1x32xf32, #tpu.memory_space<vmem>>, %arg8: memref<1x1x32xf32, #tpu.memory_space<vmem>>, %arg9: memref<1x1x32xf32, #tpu.memory_space<vmem>>, %arg10: memref<1x32x64xbf16, #tpu.memory_space<vmem>>, %arg11: memref<1x1x64xf32, #tpu.memory_space<vmem>>, %arg12: memref<1x64x32xbf16, #tpu.memory_space<vmem>>, %arg13: memref<1x1x32xf32, #tpu.memory_space<vmem>>, %arg14: memref<1x32xf32, #tpu.memory_space<vmem>>, %arg15: memref<1x32xf32, #tpu.memory_space<vmem>>, %arg16: memref<2x32xf32, #tpu.memory_space<vmem>>, %arg17: memref<16x32xf32, #tpu.memory_space<vmem>>, %arg18: memref<8x8xf32, #tpu.memory_space<vmem>>) attributes {dimension_semantics = [#tpu.dimension_semantics<arbitrary>], iteration_bounds = array<i64: 2>, scalar_prefetch = 0 : i64, scratch_operands = 2 : i64, tpu.core_type = #tpu.core_type<tc>, window_params = [{}, {transform_indices = @transform_1, window_bounds = array<i64: 1, 1, 32>}, {transform_indices = @transform_2, window_bounds = array<i64: 1, 1, 32>}, {transform_indices = @transform_3, window_bounds = array<i64: 1, 32, 96>}, {transform_indices = @transform_4, window_bounds = array<i64: 1, 1, 96>}, {transform_indices = @transform_5, window_bounds = array<i64: 1, 32, 32>}, {transform_indices = @transform_6, window_bounds = array<i64: 1, 1, 32>}, {transform_indices = @transform_7, window_bounds = array<i64: 1, 1, 32>}, {transform_indices = @transform_8, window_bounds = array<i64: 1, 1, 32>}, {transform_indices = @transform_9, window_bounds = array<i64: 1, 32, 64>}, {transform_indices = @transform_10, window_bounds = array<i64: 1, 1, 64>}, {transform_indices = @transform_11, window_bounds = array<i64: 1, 64, 32>}, {transform_indices = @transform_12, window_bounds = array<i64: 1, 1, 32>}, {pipeline_mode = #tpu.pipeline_mode<synchronous>, transform_indices = @transform_13, window_bounds = array<i64: 1, 32>}, {pipeline_mode = #tpu.pipeline_mode<synchronous>, transform_indices = @transform_14, window_bounds = array<i64: 1, 32>}, {pipeline_mode = #tpu.pipeline_mode<synchronous>, transform_indices = @transform_15, window_bounds = array<i64: 2, 32>}]} {
    %c0_i32 = arith.constant 0 : i32
    %0 = arith.cmpi eq, %arg0, %c0_i32 : i32
    %1 = arith.extui %0 : i1 to i32
    %c0_i32_0 = arith.constant 0 : i32
    %2 = arith.cmpi ne, %1, %c0_i32_0 : i32
    scf.if %2 {
      "tpu.region"() ({
        %209 = tpu.sem_alloc : memref<!tpu.dma_semaphore, #tpu.memory_space<semaphore_mem>>
        tpu.enqueue_dma source(%arg1 : memref<16x32xf32, #tpu.memory_space<any>>) target(%arg17 : memref<16x32xf32, #tpu.memory_space<vmem>>) target_semaphore(%209 : memref<!tpu.dma_semaphore, #tpu.memory_space<semaphore_mem>>)
        tpu.wait_dma2 semaphore(%209 : memref<!tpu.dma_semaphore, #tpu.memory_space<semaphore_mem>>) src(%arg1 : memref<16x32xf32, #tpu.memory_space<any>>) dst(%arg17 : memref<16x32xf32, #tpu.memory_space<vmem>>)
        tpu.yield
      }) : () -> ()
      %202 = tpu.iota {dimensions = array<i32: 0>} : vector<8x8xi32>
      %203 = tpu.iota {dimensions = array<i32: 1>} : vector<8x8xi32>
      %204 = arith.cmpi sle, %203, %202 : vector<8x8xi32>
      %cst_78 = arith.constant 0.000000e+00 : f32
      %cst_79 = arith.constant -1.000000e+09 : f32
      %205 = vector.broadcast %cst_78 : f32 to vector<8x8xf32>
      %206 = vector.broadcast %cst_79 : f32 to vector<8x8xf32>
      %207 = arith.select %204, %205, %206 : vector<8x8xi1>, vector<8x8xf32>
      %c0_80 = arith.constant 0 : index
      %c0_81 = arith.constant 0 : index
      %208 = vector.load %arg18[%c0_80, %c0_81] : memref<8x8xf32, #tpu.memory_space<vmem>>, vector<8x8xf32>
      tpu.vector_store %arg18[%c0_80, %c0_81], %207 {strides = array<i32>} : memref<8x8xf32, #tpu.memory_space<vmem>>, vector<8x8xf32>,
    } else {
    }
    %c0 = arith.constant 0 : index
    %c0_1 = arith.constant 0 : index
    %3 = vector.load %arg17[%c0, %c0_1] : memref<16x32xf32, #tpu.memory_space<vmem>>, vector<16x32xf32>
    %c0_2 = arith.constant 0 : index
    %c0_3 = arith.constant 0 : index
    %4 = vector.load %arg18[%c0_2, %c0_3] : memref<8x8xf32, #tpu.memory_space<vmem>>, vector<8x8xf32>
    %c0_4 = arith.constant 0 : index
    %c0_5 = arith.constant 0 : index
    %c0_6 = arith.constant 0 : index
    %5 = vector.load %arg2[%c0_4, %c0_5, %c0_6] : memref<1x1x32xf32, #tpu.memory_space<vmem>>, vector<1x1x32xf32>
    %6 = vector.shape_cast %5 : vector<1x1x32xf32> to vector<1x32xf32>
    %c0_7 = arith.constant 0 : index
    %c0_8 = arith.constant 0 : index
    %c0_9 = arith.constant 0 : index
    %7 = vector.load %arg3[%c0_7, %c0_8, %c0_9] : memref<1x1x32xf32, #tpu.memory_space<vmem>>, vector<1x1x32xf32>
    %8 = vector.shape_cast %7 : vector<1x1x32xf32> to vector<1x32xf32>
    %cst = arith.constant dense<0.000000e+00> : vector<16xf32>
    %9 = vector.multi_reduction <add>, %3, %cst [1] : vector<16x32xf32> to vector<16xf32>
    %10 = vector.shape_cast %9 : vector<16xf32> to vector<16x1xf32>
    %cst_10 = arith.constant 3.200000e+01 : f32
    %11 = vector.broadcast %cst_10 : f32 to vector<16x1xf32>
    %12 = arith.divf %10, %11 : vector<16x1xf32>
    %13 = vector.broadcast %12 : vector<16x1xf32> to vector<16x32xf32>
    %14 = arith.subf %3, %13 : vector<16x32xf32>
    %15 = arith.mulf %14, %14 : vector<16x32xf32>
    %cst_11 = arith.constant dense<0.000000e+00> : vector<16xf32>
    %16 = vector.multi_reduction <add>, %15, %cst_11 [1] : vector<16x32xf32> to vector<16xf32>
    %17 = vector.shape_cast %16 : vector<16xf32> to vector<16x1xf32>
    %cst_12 = arith.constant 3.200000e+01 : f32
    %18 = vector.broadcast %cst_12 : f32 to vector<16x1xf32>
    %19 = arith.divf %17, %18 : vector<16x1xf32>
    %20 = vector.broadcast %12 : vector<16x1xf32> to vector<16x32xf32>
    %21 = arith.subf %3, %20 : vector<16x32xf32>
    %cst_13 = arith.constant 9.99999974E-6 : f32
    %22 = vector.broadcast %cst_13 : f32 to vector<16x1xf32>
    %23 = arith.addf %19, %22 : vector<16x1xf32>
    %24 = math.rsqrt %23 : vector<16x1xf32>
    %25 = vector.broadcast %24 : vector<16x1xf32> to vector<16x32xf32>
    %26 = arith.mulf %21, %25 : vector<16x32xf32>
    %27 = vector.broadcast %6 : vector<1x32xf32> to vector<16x32xf32>
    %28 = arith.mulf %26, %27 : vector<16x32xf32>
    %29 = vector.broadcast %8 : vector<1x32xf32> to vector<16x32xf32>
    %30 = arith.addf %28, %29 : vector<16x32xf32>
    %31 = arith.truncf %30 : vector<16x32xf32> to vector<16x32xbf16>
    %c0_14 = arith.constant 0 : index
    %c0_15 = arith.constant 0 : index
    %c0_16 = arith.constant 0 : index
    %32 = vector.load %arg4[%c0_14, %c0_15, %c0_16] : memref<1x32x96xbf16, #tpu.memory_space<vmem>>, vector<1x32x96xbf16>
    %33 = vector.shape_cast %32 : vector<1x32x96xbf16> to vector<32x96xbf16>
    %cst_17 = arith.constant dense<0.000000e+00> : vector<16x96xf32>
    %34 = tpu.matmul %31, %33, %cst_17 {dimension_numbers = #tpu.dot_dimension_numbers<[1], [0], [0], [1], [0, 0, 1, 1], [], []>} : vector<16x32xbf16>, vector<32x96xbf16>, vector<16x96xf32> -> vector<16x96xf32>
    %c0_18 = arith.constant 0 : index
    %c0_19 = arith.constant 0 : index
    %c0_20 = arith.constant 0 : index
    %35 = vector.load %arg5[%c0_18, %c0_19, %c0_20] : memref<1x1x96xf32, #tpu.memory_space<vmem>>, vector<1x1x96xf32>
    %36 = vector.shape_cast %35 : vector<1x1x96xf32> to vector<1x96xf32>
    %37 = vector.broadcast %36 : vector<1x96xf32> to vector<16x96xf32>
    %38 = arith.addf %34, %37 : vector<16x96xf32>
    %39 = arith.truncf %38 : vector<16x96xf32> to vector<16x96xbf16>
    %40 = vector.extract_strided_slice %39 {offsets = [0, 0], sizes = [16, 8], strides = [1, 1]} : vector<16x96xbf16> to vector<16x8xbf16>
    %41 = vector.shape_cast %40 : vector<16x8xbf16> to vector<2x8x8xbf16>
    %42 = vector.extract_strided_slice %39 {offsets = [0, 32], sizes = [16, 8], strides = [1, 1]} : vector<16x96xbf16> to vector<16x8xbf16>
    %43 = vector.shape_cast %42 : vector<16x8xbf16> to vector<2x8x8xbf16>
    %44 = vector.extract_strided_slice %39 {offsets = [0, 64], sizes = [16, 8], strides = [1, 1]} : vector<16x96xbf16> to vector<16x8xbf16>
    %45 = vector.shape_cast %44 : vector<16x8xbf16> to vector<2x8x8xbf16>
    "tpu.trace_start"() <{level = 10 : i32, message = "bqd,bkd->bqk"}> : () -> ()
    %cst_21 = arith.constant dense<0.000000e+00> : vector<2x8x8xf32>
    %46 = tpu.matmul %41, %43, %cst_21 {dimension_numbers = #tpu.dot_dimension_numbers<[2], [2], [1], [1], [0, 0, 0, 1, 1, 1], [0], [0]>} : vector<2x8x8xbf16>, vector<2x8x8xbf16>, vector<2x8x8xf32> -> vector<2x8x8xf32>
    "tpu.trace_stop"() : () -> ()
    %cst_22 = arith.constant 0.353553385 : f32
    %47 = vector.broadcast %cst_22 : f32 to vector<2x8x8xf32>
    %48 = arith.mulf %46, %47 : vector<2x8x8xf32>
    %49 = vector.shape_cast %4 : vector<8x8xf32> to vector<1x8x8xf32>
    %50 = vector.broadcast %49 : vector<1x8x8xf32> to vector<2x8x8xf32>
    %51 = arith.addf %48, %50 : vector<2x8x8xf32>
    %cst_23 = arith.constant dense<0xFF800000> : vector<2x8xf32>
    %52 = vector.multi_reduction <maximumf>, %51, %cst_23 [2] : vector<2x8x8xf32> to vector<2x8xf32>
    %53 = vector.shape_cast %52 : vector<2x8xf32> to vector<2x8x1xf32>
    %54 = vector.broadcast %53 : vector<2x8x1xf32> to vector<2x8x8xf32>
    %55 = arith.subf %51, %54 : vector<2x8x8xf32>
    %56 = math.exp %55 : vector<2x8x8xf32>
    %cst_24 = arith.constant dense<0.000000e+00> : vector<2x8xf32>
    %57 = vector.multi_reduction <add>, %56, %cst_24 [2] : vector<2x8x8xf32> to vector<2x8xf32>
    %58 = vector.shape_cast %57 : vector<2x8xf32> to vector<2x8x1xf32>
    %59 = tpu.reciprocal %58 {approx = true} : vector<2x8x1xf32> -> vector<2x8x1xf32>
    %60 = vector.broadcast %59 : vector<2x8x1xf32> to vector<2x8x8xf32>
    %61 = arith.mulf %56, %60 : vector<2x8x8xf32>
    %62 = arith.truncf %61 : vector<2x8x8xf32> to vector<2x8x8xbf16>
    "tpu.trace_start"() <{level = 10 : i32, message = "bqk,bkd->bqd"}> : () -> ()
    %cst_25 = arith.constant dense<0.000000e+00> : vector<2x8x8xf32>
    %63 = tpu.matmul %62, %45, %cst_25 {dimension_numbers = #tpu.dot_dimension_numbers<[2], [1], [1], [2], [0, 0, 0, 1, 1, 2], [0], [0]>} : vector<2x8x8xbf16>, vector<2x8x8xbf16>, vector<2x8x8xf32> -> vector<2x8x8xf32>
    "tpu.trace_stop"() : () -> ()
    %64 = vector.extract_strided_slice %39 {offsets = [0, 8], sizes = [16, 8], strides = [1, 1]} : vector<16x96xbf16> to vector<16x8xbf16>
    %65 = vector.shape_cast %64 : vector<16x8xbf16> to vector<2x8x8xbf16>
    %66 = vector.extract_strided_slice %39 {offsets = [0, 40], sizes = [16, 8], strides = [1, 1]} : vector<16x96xbf16> to vector<16x8xbf16>
    %67 = vector.shape_cast %66 : vector<16x8xbf16> to vector<2x8x8xbf16>
    %68 = vector.extract_strided_slice %39 {offsets = [0, 72], sizes = [16, 8], strides = [1, 1]} : vector<16x96xbf16> to vector<16x8xbf16>
    %69 = vector.shape_cast %68 : vector<16x8xbf16> to vector<2x8x8xbf16>
    "tpu.trace_start"() <{level = 10 : i32, message = "bqd,bkd->bqk"}> : () -> ()
    %cst_26 = arith.constant dense<0.000000e+00> : vector<2x8x8xf32>
    %70 = tpu.matmul %65, %67, %cst_26 {dimension_numbers = #tpu.dot_dimension_numbers<[2], [2], [1], [1], [0, 0, 0, 1, 1, 1], [0], [0]>} : vector<2x8x8xbf16>, vector<2x8x8xbf16>, vector<2x8x8xf32> -> vector<2x8x8xf32>
    "tpu.trace_stop"() : () -> ()
    %cst_27 = arith.constant 0.353553385 : f32
    %71 = vector.broadcast %cst_27 : f32 to vector<2x8x8xf32>
    %72 = arith.mulf %70, %71 : vector<2x8x8xf32>
    %73 = vector.shape_cast %4 : vector<8x8xf32> to vector<1x8x8xf32>
    %74 = vector.broadcast %73 : vector<1x8x8xf32> to vector<2x8x8xf32>
    %75 = arith.addf %72, %74 : vector<2x8x8xf32>
    %cst_28 = arith.constant dense<0xFF800000> : vector<2x8xf32>
    %76 = vector.multi_reduction <maximumf>, %75, %cst_28 [2] : vector<2x8x8xf32> to vector<2x8xf32>
    %77 = vector.shape_cast %76 : vector<2x8xf32> to vector<2x8x1xf32>
    %78 = vector.broadcast %77 : vector<2x8x1xf32> to vector<2x8x8xf32>
    %79 = arith.subf %75, %78 : vector<2x8x8xf32>
    %80 = math.exp %79 : vector<2x8x8xf32>
    %cst_29 = arith.constant dense<0.000000e+00> : vector<2x8xf32>
    %81 = vector.multi_reduction <add>, %80, %cst_29 [2] : vector<2x8x8xf32> to vector<2x8xf32>
    %82 = vector.shape_cast %81 : vector<2x8xf32> to vector<2x8x1xf32>
    %83 = tpu.reciprocal %82 {approx = true} : vector<2x8x1xf32> -> vector<2x8x1xf32>
    %84 = vector.broadcast %83 : vector<2x8x1xf32> to vector<2x8x8xf32>
    %85 = arith.mulf %80, %84 : vector<2x8x8xf32>
    %86 = arith.truncf %85 : vector<2x8x8xf32> to vector<2x8x8xbf16>
    "tpu.trace_start"() <{level = 10 : i32, message = "bqk,bkd->bqd"}> : () -> ()
    %cst_30 = arith.constant dense<0.000000e+00> : vector<2x8x8xf32>
    %87 = tpu.matmul %86, %69, %cst_30 {dimension_numbers = #tpu.dot_dimension_numbers<[2], [1], [1], [2], [0, 0, 0, 1, 1, 2], [0], [0]>} : vector<2x8x8xbf16>, vector<2x8x8xbf16>, vector<2x8x8xf32> -> vector<2x8x8xf32>
    "tpu.trace_stop"() : () -> ()
    %88 = vector.extract_strided_slice %39 {offsets = [0, 16], sizes = [16, 8], strides = [1, 1]} : vector<16x96xbf16> to vector<16x8xbf16>
    %89 = vector.shape_cast %88 : vector<16x8xbf16> to vector<2x8x8xbf16>
    %90 = vector.extract_strided_slice %39 {offsets = [0, 48], sizes = [16, 8], strides = [1, 1]} : vector<16x96xbf16> to vector<16x8xbf16>
    %91 = vector.shape_cast %90 : vector<16x8xbf16> to vector<2x8x8xbf16>
    %92 = vector.extract_strided_slice %39 {offsets = [0, 80], sizes = [16, 8], strides = [1, 1]} : vector<16x96xbf16> to vector<16x8xbf16>
    %93 = vector.shape_cast %92 : vector<16x8xbf16> to vector<2x8x8xbf16>
    "tpu.trace_start"() <{level = 10 : i32, message = "bqd,bkd->bqk"}> : () -> ()
    %cst_31 = arith.constant dense<0.000000e+00> : vector<2x8x8xf32>
    %94 = tpu.matmul %89, %91, %cst_31 {dimension_numbers = #tpu.dot_dimension_numbers<[2], [2], [1], [1], [0, 0, 0, 1, 1, 1], [0], [0]>} : vector<2x8x8xbf16>, vector<2x8x8xbf16>, vector<2x8x8xf32> -> vector<2x8x8xf32>
    "tpu.trace_stop"() : () -> ()
    %cst_32 = arith.constant 0.353553385 : f32
    %95 = vector.broadcast %cst_32 : f32 to vector<2x8x8xf32>
    %96 = arith.mulf %94, %95 : vector<2x8x8xf32>
    %97 = vector.shape_cast %4 : vector<8x8xf32> to vector<1x8x8xf32>
    %98 = vector.broadcast %97 : vector<1x8x8xf32> to vector<2x8x8xf32>
    %99 = arith.addf %96, %98 : vector<2x8x8xf32>
    %cst_33 = arith.constant dense<0xFF800000> : vector<2x8xf32>
    %100 = vector.multi_reduction <maximumf>, %99, %cst_33 [2] : vector<2x8x8xf32> to vector<2x8xf32>
    %101 = vector.shape_cast %100 : vector<2x8xf32> to vector<2x8x1xf32>
    %102 = vector.broadcast %101 : vector<2x8x1xf32> to vector<2x8x8xf32>
    %103 = arith.subf %99, %102 : vector<2x8x8xf32>
    %104 = math.exp %103 : vector<2x8x8xf32>
    %cst_34 = arith.constant dense<0.000000e+00> : vector<2x8xf32>
    %105 = vector.multi_reduction <add>, %104, %cst_34 [2] : vector<2x8x8xf32> to vector<2x8xf32>
    %106 = vector.shape_cast %105 : vector<2x8xf32> to vector<2x8x1xf32>
    %107 = tpu.reciprocal %106 {approx = true} : vector<2x8x1xf32> -> vector<2x8x1xf32>
    %108 = vector.broadcast %107 : vector<2x8x1xf32> to vector<2x8x8xf32>
    %109 = arith.mulf %104, %108 : vector<2x8x8xf32>
    %110 = arith.truncf %109 : vector<2x8x8xf32> to vector<2x8x8xbf16>
    "tpu.trace_start"() <{level = 10 : i32, message = "bqk,bkd->bqd"}> : () -> ()
    %cst_35 = arith.constant dense<0.000000e+00> : vector<2x8x8xf32>
    %111 = tpu.matmul %110, %93, %cst_35 {dimension_numbers = #tpu.dot_dimension_numbers<[2], [1], [1], [2], [0, 0, 0, 1, 1, 2], [0], [0]>} : vector<2x8x8xbf16>, vector<2x8x8xbf16>, vector<2x8x8xf32> -> vector<2x8x8xf32>
    "tpu.trace_stop"() : () -> ()
    %112 = vector.extract_strided_slice %39 {offsets = [0, 24], sizes = [16, 8], strides = [1, 1]} : vector<16x96xbf16> to vector<16x8xbf16>
    %113 = vector.shape_cast %112 : vector<16x8xbf16> to vector<2x8x8xbf16>
    %114 = vector.extract_strided_slice %39 {offsets = [0, 56], sizes = [16, 8], strides = [1, 1]} : vector<16x96xbf16> to vector<16x8xbf16>
    %115 = vector.shape_cast %114 : vector<16x8xbf16> to vector<2x8x8xbf16>
    %116 = vector.extract_strided_slice %39 {offsets = [0, 88], sizes = [16, 8], strides = [1, 1]} : vector<16x96xbf16> to vector<16x8xbf16>
    %117 = vector.shape_cast %116 : vector<16x8xbf16> to vector<2x8x8xbf16>
    "tpu.trace_start"() <{level = 10 : i32, message = "bqd,bkd->bqk"}> : () -> ()
    %cst_36 = arith.constant dense<0.000000e+00> : vector<2x8x8xf32>
    %118 = tpu.matmul %113, %115, %cst_36 {dimension_numbers = #tpu.dot_dimension_numbers<[2], [2], [1], [1], [0, 0, 0, 1, 1, 1], [0], [0]>} : vector<2x8x8xbf16>, vector<2x8x8xbf16>, vector<2x8x8xf32> -> vector<2x8x8xf32>
    "tpu.trace_stop"() : () -> ()
    %cst_37 = arith.constant 0.353553385 : f32
    %119 = vector.broadcast %cst_37 : f32 to vector<2x8x8xf32>
    %120 = arith.mulf %118, %119 : vector<2x8x8xf32>
    %121 = vector.shape_cast %4 : vector<8x8xf32> to vector<1x8x8xf32>
    %122 = vector.broadcast %121 : vector<1x8x8xf32> to vector<2x8x8xf32>
    %123 = arith.addf %120, %122 : vector<2x8x8xf32>
    %cst_38 = arith.constant dense<0xFF800000> : vector<2x8xf32>
    %124 = vector.multi_reduction <maximumf>, %123, %cst_38 [2] : vector<2x8x8xf32> to vector<2x8xf32>
    %125 = vector.shape_cast %124 : vector<2x8xf32> to vector<2x8x1xf32>
    %126 = vector.broadcast %125 : vector<2x8x1xf32> to vector<2x8x8xf32>
    %127 = arith.subf %123, %126 : vector<2x8x8xf32>
    %128 = math.exp %127 : vector<2x8x8xf32>
    %cst_39 = arith.constant dense<0.000000e+00> : vector<2x8xf32>
    %129 = vector.multi_reduction <add>, %128, %cst_39 [2] : vector<2x8x8xf32> to vector<2x8xf32>
    %130 = vector.shape_cast %129 : vector<2x8xf32> to vector<2x8x1xf32>
    %131 = tpu.reciprocal %130 {approx = true} : vector<2x8x1xf32> -> vector<2x8x1xf32>
    %132 = vector.broadcast %131 : vector<2x8x1xf32> to vector<2x8x8xf32>
    %133 = arith.mulf %128, %132 : vector<2x8x8xf32>
    %134 = arith.truncf %133 : vector<2x8x8xf32> to vector<2x8x8xbf16>
    "tpu.trace_start"() <{level = 10 : i32, message = "bqk,bkd->bqd"}> : () -> ()
    %cst_40 = arith.constant dense<0.000000e+00> : vector<2x8x8xf32>
    %135 = tpu.matmul %134, %117, %cst_40 {dimension_numbers = #tpu.dot_dimension_numbers<[2], [1], [1], [2], [0, 0, 0, 1, 1, 2], [0], [0]>} : vector<2x8x8xbf16>, vector<2x8x8xbf16>, vector<2x8x8xf32> -> vector<2x8x8xf32>
    "tpu.trace_stop"() : () -> ()
    %136 = tpu.concatenate %63, %87, %111, %135 in 2 : vector<2x8x8xf32>, vector<2x8x8xf32>, vector<2x8x8xf32>, vector<2x8x8xf32> -> vector<2x8x32xf32>
    %137 = vector.shape_cast %136 : vector<2x8x32xf32> to vector<16x32xf32>
    %138 = arith.truncf %137 : vector<16x32xf32> to vector<16x32xbf16>
    %c0_41 = arith.constant 0 : index
    %c0_42 = arith.constant 0 : index
    %c0_43 = arith.constant 0 : index
    %139 = vector.load %arg6[%c0_41, %c0_42, %c0_43] : memref<1x32x32xbf16, #tpu.memory_space<vmem>>, vector<1x32x32xbf16>
    %140 = vector.shape_cast %139 : vector<1x32x32xbf16> to vector<32x32xbf16>
    %cst_44 = arith.constant dense<0.000000e+00> : vector<16x32xf32>
    %141 = tpu.matmul %138, %140, %cst_44 {dimension_numbers = #tpu.dot_dimension_numbers<[1], [0], [0], [1], [0, 0, 1, 1], [], []>} : vector<16x32xbf16>, vector<32x32xbf16>, vector<16x32xf32> -> vector<16x32xf32>
    %c0_45 = arith.constant 0 : index
    %c0_46 = arith.constant 0 : index
    %c0_47 = arith.constant 0 : index
    %142 = vector.load %arg7[%c0_45, %c0_46, %c0_47] : memref<1x1x32xf32, #tpu.memory_space<vmem>>, vector<1x1x32xf32>
    %143 = vector.shape_cast %142 : vector<1x1x32xf32> to vector<1x32xf32>
    %144 = vector.broadcast %143 : vector<1x32xf32> to vector<16x32xf32>
    %145 = arith.addf %141, %144 : vector<16x32xf32>
    %146 = arith.addf %3, %145 : vector<16x32xf32>
    %c0_48 = arith.constant 0 : index
    %c0_49 = arith.constant 0 : index
    %c0_50 = arith.constant 0 : index
    %147 = vector.load %arg8[%c0_48, %c0_49, %c0_50] : memref<1x1x32xf32, #tpu.memory_space<vmem>>, vector<1x1x32xf32>
    %148 = vector.shape_cast %147 : vector<1x1x32xf32> to vector<1x32xf32>
    %c0_51 = arith.constant 0 : index
    %c0_52 = arith.constant 0 : index
    %c0_53 = arith.constant 0 : index
    %149 = vector.load %arg9[%c0_51, %c0_52, %c0_53] : memref<1x1x32xf32, #tpu.memory_space<vmem>>, vector<1x1x32xf32>
    %150 = vector.shape_cast %149 : vector<1x1x32xf32> to vector<1x32xf32>
    %cst_54 = arith.constant dense<0.000000e+00> : vector<16xf32>
    %151 = vector.multi_reduction <add>, %146, %cst_54 [1] : vector<16x32xf32> to vector<16xf32>
    %152 = vector.shape_cast %151 : vector<16xf32> to vector<16x1xf32>
    %cst_55 = arith.constant 3.200000e+01 : f32
    %153 = vector.broadcast %cst_55 : f32 to vector<16x1xf32>
    %154 = arith.divf %152, %153 : vector<16x1xf32>
    %155 = vector.broadcast %154 : vector<16x1xf32> to vector<16x32xf32>
    %156 = arith.subf %146, %155 : vector<16x32xf32>
    %157 = arith.mulf %156, %156 : vector<16x32xf32>
    %cst_56 = arith.constant dense<0.000000e+00> : vector<16xf32>
    %158 = vector.multi_reduction <add>, %157, %cst_56 [1] : vector<16x32xf32> to vector<16xf32>
    %159 = vector.shape_cast %158 : vector<16xf32> to vector<16x1xf32>
    %cst_57 = arith.constant 3.200000e+01 : f32
    %160 = vector.broadcast %cst_57 : f32 to vector<16x1xf32>
    %161 = arith.divf %159, %160 : vector<16x1xf32>
    %162 = vector.broadcast %154 : vector<16x1xf32> to vector<16x32xf32>
    %163 = arith.subf %146, %162 : vector<16x32xf32>
    %cst_58 = arith.constant 9.99999974E-6 : f32
    %164 = vector.broadcast %cst_58 : f32 to vector<16x1xf32>
    %165 = arith.addf %161, %164 : vector<16x1xf32>
    %166 = math.rsqrt %165 : vector<16x1xf32>
    %167 = vector.broadcast %166 : vector<16x1xf32> to vector<16x32xf32>
    %168 = arith.mulf %163, %167 : vector<16x32xf32>
    %169 = vector.broadcast %148 : vector<1x32xf32> to vector<16x32xf32>
    %170 = arith.mulf %168, %169 : vector<16x32xf32>
    %171 = vector.broadcast %150 : vector<1x32xf32> to vector<16x32xf32>
    %172 = arith.addf %170, %171 : vector<16x32xf32>
    %173 = arith.truncf %172 : vector<16x32xf32> to vector<16x32xbf16>
    %c0_59 = arith.constant 0 : index
    %c0_60 = arith.constant 0 : index
    %c0_61 = arith.constant 0 : index
    %174 = vector.load %arg10[%c0_59, %c0_60, %c0_61] : memref<1x32x64xbf16, #tpu.memory_space<vmem>>, vector<1x32x64xbf16>
    %175 = vector.shape_cast %174 : vector<1x32x64xbf16> to vector<32x64xbf16>
    %cst_62 = arith.constant dense<0.000000e+00> : vector<16x64xf32>
    %176 = tpu.matmul %173, %175, %cst_62 {dimension_numbers = #tpu.dot_dimension_numbers<[1], [0], [0], [1], [0, 0, 1, 1], [], []>} : vector<16x32xbf16>, vector<32x64xbf16>, vector<16x64xf32> -> vector<16x64xf32>
    %c0_63 = arith.constant 0 : index
    %c0_64 = arith.constant 0 : index
    %c0_65 = arith.constant 0 : index
    %177 = vector.load %arg11[%c0_63, %c0_64, %c0_65] : memref<1x1x64xf32, #tpu.memory_space<vmem>>, vector<1x1x64xf32>
    %178 = vector.shape_cast %177 : vector<1x1x64xf32> to vector<1x64xf32>
    %179 = vector.broadcast %178 : vector<1x64xf32> to vector<16x64xf32>
    %180 = arith.addf %176, %179 : vector<16x64xf32>
    %cst_66 = arith.constant 1.702000e+00 : f32
    %181 = vector.broadcast %cst_66 : f32 to vector<16x64xf32>
    %182 = arith.mulf %181, %180 : vector<16x64xf32>
    %183 = arith.negf %182 : vector<16x64xf32>
    %184 = math.exp %183 : vector<16x64xf32>
    %cst_67 = arith.constant 1.000000e+00 : f32
    %185 = vector.broadcast %cst_67 : f32 to vector<16x64xf32>
    %186 = arith.addf %185, %184 : vector<16x64xf32>
    %187 = arith.divf %185, %186 : vector<16x64xf32>
    %188 = arith.mulf %180, %187 : vector<16x64xf32>
    %189 = arith.truncf %188 : vector<16x64xf32> to vector<16x64xbf16>
    %c0_68 = arith.constant 0 : index
    %c0_69 = arith.constant 0 : index
    %c0_70 = arith.constant 0 : index
    %190 = vector.load %arg12[%c0_68, %c0_69, %c0_70] : memref<1x64x32xbf16, #tpu.memory_space<vmem>>, vector<1x64x32xbf16>
    %191 = vector.shape_cast %190 : vector<1x64x32xbf16> to vector<64x32xbf16>
    %cst_71 = arith.constant dense<0.000000e+00> : vector<16x32xf32>
    %192 = tpu.matmul %189, %191, %cst_71 {dimension_numbers = #tpu.dot_dimension_numbers<[1], [0], [0], [1], [0, 0, 1, 1], [], []>} : vector<16x64xbf16>, vector<64x32xbf16>, vector<16x32xf32> -> vector<16x32xf32>
    %c0_72 = arith.constant 0 : index
    %c0_73 = arith.constant 0 : index
    %c0_74 = arith.constant 0 : index
    %193 = vector.load %arg13[%c0_72, %c0_73, %c0_74] : memref<1x1x32xf32, #tpu.memory_space<vmem>>, vector<1x1x32xf32>
    %194 = vector.shape_cast %193 : vector<1x1x32xf32> to vector<1x32xf32>
    %195 = vector.broadcast %194 : vector<1x32xf32> to vector<16x32xf32>
    %196 = arith.addf %192, %195 : vector<16x32xf32>
    %197 = arith.addf %146, %196 : vector<16x32xf32>
    %c0_75 = arith.constant 0 : index
    %c0_76 = arith.constant 0 : index
    %198 = vector.load %arg17[%c0_75, %c0_76] : memref<16x32xf32, #tpu.memory_space<vmem>>, vector<16x32xf32>
    tpu.vector_store %arg17[%c0_75, %c0_76], %197 {strides = array<i32>} : memref<16x32xf32, #tpu.memory_space<vmem>>, vector<16x32xf32>,
    %c1_i32 = arith.constant 1 : i32
    %199 = arith.cmpi eq, %arg0, %c1_i32 : i32
    %200 = arith.extui %199 : i1 to i32
    %c0_i32_77 = arith.constant 0 : i32
    %201 = arith.cmpi ne, %200, %c0_i32_77 : i32
    scf.if %201 {
      %c0_78 = arith.constant 0 : index
      %c0_79 = arith.constant 0 : index
      %202 = vector.load %arg14[%c0_78, %c0_79] : memref<1x32xf32, #tpu.memory_space<vmem>>, vector<1x32xf32>
      %c0_80 = arith.constant 0 : index
      %c0_81 = arith.constant 0 : index
      %203 = vector.load %arg15[%c0_80, %c0_81] : memref<1x32xf32, #tpu.memory_space<vmem>>, vector<1x32xf32>
      %cst_82 = arith.constant dense<0.000000e+00> : vector<16xf32>
      %204 = vector.multi_reduction <add>, %197, %cst_82 [1] : vector<16x32xf32> to vector<16xf32>
      %205 = vector.shape_cast %204 : vector<16xf32> to vector<16x1xf32>
      %cst_83 = arith.constant 3.200000e+01 : f32
      %206 = vector.broadcast %cst_83 : f32 to vector<16x1xf32>
      %207 = arith.divf %205, %206 : vector<16x1xf32>
      %208 = vector.broadcast %207 : vector<16x1xf32> to vector<16x32xf32>
      %209 = arith.subf %197, %208 : vector<16x32xf32>
      %210 = arith.mulf %209, %209 : vector<16x32xf32>
      %cst_84 = arith.constant dense<0.000000e+00> : vector<16xf32>
      %211 = vector.multi_reduction <add>, %210, %cst_84 [1] : vector<16x32xf32> to vector<16xf32>
      %212 = vector.shape_cast %211 : vector<16xf32> to vector<16x1xf32>
      %cst_85 = arith.constant 3.200000e+01 : f32
      %213 = vector.broadcast %cst_85 : f32 to vector<16x1xf32>
      %214 = arith.divf %212, %213 : vector<16x1xf32>
      %215 = vector.broadcast %207 : vector<16x1xf32> to vector<16x32xf32>
      %216 = arith.subf %197, %215 : vector<16x32xf32>
      %cst_86 = arith.constant 9.99999974E-6 : f32
      %217 = vector.broadcast %cst_86 : f32 to vector<16x1xf32>
      %218 = arith.addf %214, %217 : vector<16x1xf32>
      %219 = math.rsqrt %218 : vector<16x1xf32>
      %220 = vector.broadcast %219 : vector<16x1xf32> to vector<16x32xf32>
      %221 = arith.mulf %216, %220 : vector<16x32xf32>
      %222 = vector.broadcast %202 : vector<1x32xf32> to vector<16x32xf32>
      %223 = arith.mulf %221, %222 : vector<16x32xf32>
      %224 = vector.broadcast %203 : vector<1x32xf32> to vector<16x32xf32>
      %225 = arith.addf %223, %224 : vector<16x32xf32>
      %226 = vector.shape_cast %225 : vector<16x32xf32> to vector<2x8x32xf32>
      %cst_87 = arith.constant dense<0.000000e+00> : vector<2x32xf32>
      %227 = vector.multi_reduction <add>, %226, %cst_87 [1] : vector<2x8x32xf32> to vector<2x32xf32>
      %cst_88 = arith.constant 8.000000e+00 : f32
      %228 = vector.broadcast %cst_88 : f32 to vector<2x32xf32>
      %229 = arith.divf %227, %228 : vector<2x32xf32>
      %c0_89 = arith.constant 0 : index
      %c0_90 = arith.constant 0 : index
      %230 = vector.load %arg16[%c0_89, %c0_90] : memref<2x32xf32, #tpu.memory_space<vmem>>, vector<2x32xf32>
      tpu.vector_store %arg16[%c0_89, %c0_90], %229 {strides = array<i32>} : memref<2x32xf32, #tpu.memory_space<vmem>>, vector<2x32xf32>,
    } else {
    }
    return
  }
  func.func @transform_1(%arg0: i32) -> (i32, i32, i32) {
    %c0_i32 = arith.constant 0 : i32
    %c0_i32_0 = arith.constant 0 : i32
    %c0_i32_1 = arith.constant 0 : i32
    return %arg0, %c0_i32, %c0_i32_0 : i32, i32, i32
  }
  func.func @transform_2(%arg0: i32) -> (i32, i32, i32) {
    %c0_i32 = arith.constant 0 : i32
    %c0_i32_0 = arith.constant 0 : i32
    %c0_i32_1 = arith.constant 0 : i32
    return %arg0, %c0_i32, %c0_i32_0 : i32, i32, i32
  }
  func.func @transform_3(%arg0: i32) -> (i32, i32, i32) {
    %c0_i32 = arith.constant 0 : i32
    %c0_i32_0 = arith.constant 0 : i32
    %c0_i32_1 = arith.constant 0 : i32
    return %arg0, %c0_i32, %c0_i32_0 : i32, i32, i32
  }
  func.func @transform_4(%arg0: i32) -> (i32, i32, i32) {
    %c0_i32 = arith.constant 0 : i32
    %c0_i32_0 = arith.constant 0 : i32
    %c0_i32_1 = arith.constant 0 : i32
    return %arg0, %c0_i32, %c0_i32_0 : i32, i32, i32
  }
  func.func @transform_5(%arg0: i32) -> (i32, i32, i32) {
    %c0_i32 = arith.constant 0 : i32
    %c0_i32_0 = arith.constant 0 : i32
    %c0_i32_1 = arith.constant 0 : i32
    return %arg0, %c0_i32, %c0_i32_0 : i32, i32, i32
  }
  func.func @transform_6(%arg0: i32) -> (i32, i32, i32) {
    %c0_i32 = arith.constant 0 : i32
    %c0_i32_0 = arith.constant 0 : i32
    %c0_i32_1 = arith.constant 0 : i32
    return %arg0, %c0_i32, %c0_i32_0 : i32, i32, i32
  }
  func.func @transform_7(%arg0: i32) -> (i32, i32, i32) {
    %c0_i32 = arith.constant 0 : i32
    %c0_i32_0 = arith.constant 0 : i32
    %c0_i32_1 = arith.constant 0 : i32
    return %arg0, %c0_i32, %c0_i32_0 : i32, i32, i32
  }
  func.func @transform_8(%arg0: i32) -> (i32, i32, i32) {
    %c0_i32 = arith.constant 0 : i32
    %c0_i32_0 = arith.constant 0 : i32
    %c0_i32_1 = arith.constant 0 : i32
    return %arg0, %c0_i32, %c0_i32_0 : i32, i32, i32
  }
  func.func @transform_9(%arg0: i32) -> (i32, i32, i32) {
    %c0_i32 = arith.constant 0 : i32
    %c0_i32_0 = arith.constant 0 : i32
    %c0_i32_1 = arith.constant 0 : i32
    return %arg0, %c0_i32, %c0_i32_0 : i32, i32, i32
  }
  func.func @transform_10(%arg0: i32) -> (i32, i32, i32) {
    %c0_i32 = arith.constant 0 : i32
    %c0_i32_0 = arith.constant 0 : i32
    %c0_i32_1 = arith.constant 0 : i32
    return %arg0, %c0_i32, %c0_i32_0 : i32, i32, i32
  }
  func.func @transform_11(%arg0: i32) -> (i32, i32, i32) {
    %c0_i32 = arith.constant 0 : i32
    %c0_i32_0 = arith.constant 0 : i32
    %c0_i32_1 = arith.constant 0 : i32
    return %arg0, %c0_i32, %c0_i32_0 : i32, i32, i32
  }
  func.func @transform_12(%arg0: i32) -> (i32, i32, i32) {
    %c0_i32 = arith.constant 0 : i32
    %c0_i32_0 = arith.constant 0 : i32
    %c0_i32_1 = arith.constant 0 : i32
    return %arg0, %c0_i32, %c0_i32_0 : i32, i32, i32
  }
  func.func @transform_13(%arg0: i32) -> (i32, i32) {
    %c0_i32 = arith.constant 0 : i32
    %c0_i32_0 = arith.constant 0 : i32
    %c0_i32_1 = arith.constant 0 : i32
    return %c0_i32, %c0_i32_0 : i32, i32
  }
  func.func @transform_14(%arg0: i32) -> (i32, i32) {
    %c0_i32 = arith.constant 0 : i32
    %c0_i32_0 = arith.constant 0 : i32
    %c0_i32_1 = arith.constant 0 : i32
    return %c0_i32, %c0_i32_0 : i32, i32
  }
  func.func @transform_15(%arg0: i32) -> (i32, i32) {
    %c0_i32 = arith.constant 0 : i32
    %c0_i32_0 = arith.constant 0 : i32
    %c0_i32_1 = arith.constant 0 : i32
    return %c0_i32, %c0_i32_0 : i32, i32
  }
}

</mosaic_0001>

<bundles_post_ra>
// kernel: tpu_custom_call.1
= control target key start
LH: loop header
LB: loop body
LE: loop exit
PB: predicated region body
PF: predicated region fallthrough
CT: control target
= control target key end

     0   :  { %s2764_s0 = inlined_call_operand.hbm [shape: f32[16,32], index: 0, kind: input, shape index: {}]   ;;  %s2765_s1 = inlined_call_operand.hbm [shape: f32[2,1,32], index: 1, kind: input, shape index: {}]   ;;  %s2766_s2 = inlined_call_operand.hbm [shape: f32[2,1,32], index: 2, kind: input, shape index: {}]   ;;  %s2767_s3 = inlined_call_operand.vmem [shape: bf16[2,32,96], index: 3, kind: input, shape index: {}]   ;;  %s2768_s4 = inlined_call_operand.vmem [shape: f32[2,1,96], index: 4, kind: input, shape index: {}]   ;;  %s2769_s5 = inlined_call_operand.vmem [shape: bf16[2,32,32], index: 5, kind: input, shape index: {}]   ;;  %s2770_s6 = inlined_call_operand.vmem [shape: f32[2,1,32], index: 6, kind: input, shape index: {}]   ;;  %s2771_s7 = inlined_call_operand.hbm [shape: f32[2,1,32], index: 7, kind: input, shape index: {}]   ;;  %s2772_s8 = inlined_call_operand.vmem [shape: f32[2,1,32], index: 8, kind: input, shape index: {}]   ;;  %s2773_s9 = inlined_call_operand.vmem [shape: bf16[2,32,64], index: 9, kind: input, shape index: {}]   ;;  %s2774_s10 = inlined_call_operand.vmem [shape: f32[2,1,64], index: 10, kind: input, shape index: {}]   ;;  %s2775_s11 = inlined_call_operand.vmem [shape: bf16[2,64,32], index: 11, kind: input, shape index: {}]   ;;  %s2776_s12 = inlined_call_operand.vmem [shape: f32[2,1,32], index: 12, kind: input, shape index: {}]   ;;  %s2777_s13 = inlined_call_operand.vmem [shape: f32[1,32], index: 13, kind: input, shape index: {}]   ;;  %s2778_s14 = inlined_call_operand.vmem [shape: f32[1,32], index: 14, kind: input, shape index: {}]   ;;  %s2779_s15 = inlined_call_operand.hbm [shape: f32[2,32], index: 15, kind: output, shape index: {}]  }
   0x1   :  { %2783 = sst [smem:[#allocation23_spill]] %s2764_s0 }
   0x2   :  { %2784 = sst [smem:[#allocation24_spill]] %s2765_s1 }
   0x3   :  { %2785 = sst [smem:[#allocation25_spill]] %s2766_s2 }
   0x4   :  { %2786 = sst [smem:[#allocation26_spill]] %s2767_s3 }
   0x5   :  { %2787 = sst [smem:[#allocation27_spill]] %s2769_s5 }
   0x6   :  { %2788 = sst [smem:[#allocation28_spill]] %s2775_s11 }
   0x7   :  { %2789 = sst [smem:[#allocation29_spill]] %s2776_s12 }
   0x8   :  { %2790 = sst [smem:[#allocation30_spill]] %s2777_s13 }
   0x9   :  { %2791 = sst [smem:[#allocation31_spill]] %s2778_s14 }
   0xa   :  { %2792 = sst [smem:[#allocation32_spill]] %s2779_s15 }
   0xb   :  { %20 = vsyncpa [#allocation5], 0 }
   0xc   :  { %22 = vsyncpa [#allocation5 + $0x1], 0 }
   0xd   :  { %23 = vsyncpa [#allocation8], 0 }
   0xe   :  { %25 = vsyncpa [#allocation8 + $0x1], 0 }
   0xf   :  { %26 = vsyncpa [#allocation6], 0  ;;  %s2367_s18 = smov 0   ;;  %s2369_s19 = smov 0  }
  0x10   :  { %s2371_s20 = smov 0   ;;  %s2373_s21 = smov 0  }
  0x11 LB: > { %2793 = sst [smem:[#allocation20_spill]] %s2262_s20  ;;  %s2386_s22 = sadd.s32 4294967295, %s2266_s21   ;;  %s2266_s21 = sphi %s2373_s21, %s2814_s21   ;;  %s2262_s20 = sphi %s2371_s20, %s2816_s20   ;;  %s2258_s19 = sphi %s2369_s19, %s2818_s19   ;;  %s2254_s18 = sphi %s2367_s18, %s2817_s18  }
  0x12   : > { %s2389_s23 = sadd.s32 1, %s2266_s21   ;;  %s39_s25 = sadd.s32 1, %s2262_s20 }
  0x13   : > { %2794 = sst [smem:[#allocation21_spill]] %s2389_s23  ;;  %s36_s24 = ssub.s32 %s2266_s21, %s2389_s23 }
  0x14   : > { %p37_p0 = scmp.eq.s32.totalorder %s36_s24, 0  ;;  %p46_p1 = scmp.ne.s32.totalorder %s2262_s20, %s2258_s19 }
  0x15   : > { %p47_p2 = scmp.eq.s32.totalorder %s2266_s21, 0  ;;  %p52_p3 = scmp.ne.s32.totalorder %s2258_s19, %s2254_s18 }
  0x16   : > { %s2399_s26 = scalar_select %p37_p0, %s2262_s20, %s39_s25  }
  0x17   : > { %p48_p4 = por %p47_p2, %p46_p1  ;;  %p53_p5 = scmp.eq.s32.totalorder %s2386_s22, 0 }
  0x18   : > { %2795 = sst [smem:[#allocation22_spill]] %s2399_s26  ;;  %p1945_p6 = scmp.lt.s32.totalorder %s2266_s21, 2 }
  0x19   : > { %p2403_p7 = por %p53_p5, %p52_p3  ;;  %s2408_s28 = sand.u32 1, %s2262_s20  }
  0x1a   : > { %p2410_p8 = pnand %p1945_p6, %p48_p4  ;;  %s448_s30 = sand.u32 1, %s2266_s21  }
  0x1b   : > { %s2798_s2 = sld [smem:[#allocation25_spill]]  ;;  %s451_s25 = scalar_lea.vmem [#allocation7], %s2408_s28 }
  0x1c   : > { %s458_s26 = sshll.u32 %s451_s25, 4  ;;  %s2420_s23 = scalar_lea.sflag [#allocation8], %s448_s30  ;;  %s459_s26 = int_to_ptr.vmem [resolvable:$true] %s458_s26 }
  0x1d   : > { %p2084_p10 = pneg %p2410_p8 }
  0x21   : > { %s454_s18 = scalar_lea.hbm %s2798_s2, %s2266_s21  ;;  %s2087_s17 = scalar_lea.hbm %s2798_s2, 2 }
  0x22   : > { %s456_s24 = sshll.u32 %s454_s18, 4  ;;  %s457_s24 = int_to_ptr.hbm [resolvable:$true] %s456_s24 }
  0x23   : > { %s2080_s20 = sshra.s32 %s457_s24, 4  ;;  %s2081_s20 = int_to_ptr.hbm [resolvable:$true] %s2080_s20 }
  0x24   : > { %s2082_s15 = scalar_lea.hbm %s2081_s20, 1  ;;  %p2088_p13 = scmp.lt.s32.totalorder %s2081_s20, %s2798_s2 }
  0x25   : > { %p2083_p9 = scmp.ne.s32.totalorder %s2081_s20, %s2082_s15  ;;  %p2089_p0 = scmp.lt.s32.totalorder %s2087_s17, %s2082_s15 }
  0x27   : > { %p2085_p11 = pnand %p2084_p10, %p2083_p9  ;;  %p2090_p1 = por %p2089_p0, %p2088_p13 }
  0x29   : > { %p2086_p12 = pneg %p2085_p11 }
  0x2b   : > { %p2091_p2 = pnand %p2090_p1, %p2086_p12 }
  0x2d   : > { %2094 = shalt.err (!%p2091_p2)
}
  0x2e   : > { %1941 = dma.hbm_to_vmem [thread:$0]  (!%p2410_p8), %s457_s24, 16, %s459_s26, %s2420_s23  }
  0x2f   : > { %p1834_p3 = scmp.ge.s32.totalorder %s2266_s21, 1  ;;  %p542_p4 = scmp.lt.s32.totalorder %s2266_s21, 3 }
  0x30   : > { %s2800_s1 = sld [smem:[#allocation24_spill]]  ;;  %s434_s17 = scalar_lea.vmem [#allocation4], %s2408_s28 }
  0x31   : > { %p2438_p5 = pnand %p1834_p3, %p542_p4  ;;  %s441_s18 = sshll.u32 %s434_s17, 4  ;;  %s442_s18 = int_to_ptr.vmem [resolvable:$true] %s441_s18 }
  0x32   : > { %s432_s25 = scalar_lea.sflag [#allocation5], %s2408_s28 }
  0x36   : > { %s437_s30 = scalar_lea.hbm %s2800_s1, %s2266_s21  ;;  %s2117_s0 = scalar_lea.hbm %s2800_s1, 2 }
  0x37   : > { %s439_s16 = sshll.u32 %s437_s30, 4  ;;  %s440_s16 = int_to_ptr.hbm [resolvable:$true] %s439_s16 }
  0x38   : > { %s2110_s2 = sshra.s32 %s440_s16, 4  ;;  %s2111_s2 = int_to_ptr.hbm [resolvable:$true] %s2110_s2 }
  0x39   : > { %s2112_s13 = scalar_lea.hbm %s2111_s2, 1  ;;  %p2118_p12 = scmp.lt.s32.totalorder %s2111_s2, %s2800_s1 }
  0x3a   : > { %p2113_p6 = scmp.ne.s32.totalorder %s2111_s2, %s2112_s13  ;;  %p2119_p13 = scmp.lt.s32.totalorder %s2117_s0, %s2112_s13 }
  0x3c   : > { %p2115_p9 = pnand %p2113_p6, %p2084_p10  ;;  %p2120_p0 = por %p2119_p13, %p2118_p12 }
  0x3e   : > { %p2116_p11 = pneg %p2115_p9 }
  0x40   : > { %p2121_p1 = pnand %p2120_p0, %p2116_p11 }
  0x42   : > { %2124 = shalt.err (!%p2121_p1)
}
  0x43   : > { %1938 = dma.hbm_to_vmem [thread:$0]  (!%p2410_p8), %s440_s16, 16, %s442_s18, %s432_s25  }
  0x44   : > { %s499_s11 = scalar_lea.hbm %s2771_s7, %s2266_s21  ;;  %s496_s24 = scalar_lea.vmem [#allocation9], %s2408_s28 }
  0x45   : > { %s501_s26 = sshll.u32 %s499_s11, 4  ;;  %s503_s12 = sshll.u32 %s496_s24, 4  ;;  %s502_s26 = int_to_ptr.hbm [resolvable:$true] %s501_s26  ;;  %s504_s12 = int_to_ptr.vmem [resolvable:$true] %s503_s12 }
  0x46   : > { %s2140_s2 = sshra.s32 %s502_s26, 4  ;;  %s2147_s16 = scalar_lea.hbm %s2771_s7, 2  ;;  %s2141_s2 = int_to_ptr.hbm [resolvable:$true] %s2140_s2 }
  0x47   : > { %s2142_s0 = scalar_lea.hbm %s2141_s2, 1  ;;  %p2148_p6 = scmp.lt.s32.totalorder %s2141_s2, %s2771_s7 }
  0x48   : > { %p2143_p2 = scmp.ne.s32.totalorder %s2141_s2, %s2142_s0  ;;  %p2149_p9 = scmp.lt.s32.totalorder %s2147_s16, %s2142_s0 }
  0x4a   : > { %p2145_p3 = pnand %p2143_p2, %p2084_p10  ;;  %p2150_p11 = por %p2149_p9, %p2148_p6 }
  0x4c   : > { %p2146_p4 = pneg %p2145_p3 }
  0x4e   : > { %p2151_p12 = pnand %p2150_p11, %p2146_p4 }
  0x50   : > { %2154 = shalt.err (!%p2151_p12)
}
  0x51   : > { %1944 = dma.hbm_to_vmem [thread:$0]  (!%p2410_p8), %s502_s26, 16, %s504_s12, %s2420_s23  }
  0x52   : > { %546 = sbr.rel (%p2438_p5) target bundleno = 2440 (0x988), region = 76  ;;  %s2479_s11 = sand.u32 (!%p2438_p5), 1, %s2258_s19  }
  0x53   : > { %s549_s21 = scalar_lea.sflag (!%p2438_p5), [#allocation5], %s2479_s11 }
  0x57   : > { %2239 = dma.done.wait (%p2403_p7), %s549_s21, 16  }
  0x58   : > { %2241 = vsyncadd (%p2403_p7), %s549_s21, 4294967280  ;;  %s557_s12 = sand.u32 1, %s2386_s22  }
  0x59   : > { %s558_s23 = scalar_lea.sflag [#allocation8], %s557_s12 }
  0x5a   : > { %2243 = dma.done.wait (%p2403_p7), %s558_s23, 32  }
  0x5b   : > { %2245 = vsyncadd (%p2403_p7), %s558_s23, 4294967264  ;;  %p652_p8 = scmp.lt.s32.totalorder %s2386_s22, 1  ;;  %s2801_s3 = sld [smem:[#allocation26_spill]] }
  0x5c   : > { %s2802_s5 = sld [smem:[#allocation27_spill]]  ;;  %s569_s21 = scalar_lea.vmem [#allocation9], %s2479_s11 }
  0x5d   : > { %s2495_s14 = scalar_select %p652_p8, %s2386_s22, 1 }
  0x5e   : > { %s2803_s1 = sld [smem:[#allocation29_spill]]  ;;  %p1843_p7 = scmp.ne.s32.totalorder %s2386_s22, 0 }
  0x5f   : > { %s1911_s20 = sshll.u32 %s2495_s14, 4  ;;  %s670_s23 = scalar_lea.vmem %s2772_s8, %s2495_s14 }
  0x60   : > { %s2523_s26 = scalar_lea.vmem %s2773_s9, %s1911_s20  ;;  %s678_s29 = scalar_lea.vmem %s2774_s10, %s2495_s14 }
  0x61   : > { %s2505_s2 = scalar_lea.vmem %s2801_s3, %s1911_s20  ;;  %s1914_s0 = sshll.u32 %s2495_s14, 5 }
  0x62   : > { %s2510_s15 = scalar_lea.vmem %s2802_s5, %s1911_s20  ;;  %s2804_s25 = sld [smem:[#allocation28_spill]] }
  0x64   : > { %s686_s3 = scalar_lea.vmem %s2803_s1, %s2495_s14  ;;  %691 = sbr.rel (%p1843_p7) target bundleno = 121 (0x79), region = 92 }
  0x68   : > { %s2537_s5 = scalar_lea.vmem %s2804_s25, %s1914_s0 }
  0x69   : > { %s2805_s30 = sld [smem:[#allocation23_spill]]  ;;  %s2268_s27 = smov [#allocation2]  }
  0x6a   : > { %s701_s24 = sshll.u32 %s2268_s27, 4  ;;  %s702_s24 = int_to_ptr.vmem [resolvable:$true] %s701_s24 }
  0x6f   : > { %s699_s17 = sshll.u32 %s2805_s30, 4  ;;  %s700_s17 = int_to_ptr.hbm [resolvable:$true] %s699_s17 }
  0x70   : > { %704 = dma.hbm_to_vmem [thread:$0]  %s700_s17, 256, %s702_s24, [#allocation11] }
  0x71   : > { %2246 = dma.done.wait [#allocation11], 256 }
  0x72   : > { %2247 = vsyncadd [#allocation11], 4294967040  ;;  %v708_v0 = vlaneseq  ;;  %vm714_vm0 = vcmask 64512   ;;  %v2269_v3 = vmov -1e+09  }
  0x74   : > { %v709_v1 = vshrl.u32 %v708_v0, 7  ;;  %v711_v2 = vand.u32 127, %v708_v0 }
  0x76   : > { %vm712_vm1 = vcmp.le.s32.totalorder %v711_v2, %v709_v1 }
  0x77   : > { %v713_v4 = vsel %vm712_vm1, 0.0, %v2269_v3 }
  0x78   : > { %715 = vst.msk [vmem:[#allocation3] sm:$0xff] %vm714_vm0, %v713_v4 }
  0x79 PF: > { %v2544_v5 = vld [vmem:[#allocation2] sm:$0xff]  ;;  %vm721_vm2 = vcmask 261120   ;;  %v2548_v7 = vld [vmem:[#allocation2 + $0x8] sm:$0xff]  ;;  %v2270_v9 = vmov 32.0   ;;  %s2806_s1 = scalar_lea.vmem [#allocation4], %s2479_s11  ;;  %s2807_s28 = scalar_lea.vmem [#allocation7], %s2479_s11 }
  0x7a   : > { %v722_v6 = vsel %vm721_vm2, %v2544_v5, 0.0  ;;  %v725_v8 = vsel %vm721_vm2, %v2548_v7, 0.0  ;;  %2022 = vrcp.f32 %v2270_v9  ;;  %v1916_v26 = vld [vmem:[%s2505_s2 + $0x8] sm:$0xff]  ;;  %v1915_v28 = vld [vmem:[%s2505_s2] sm:$0xff]  ;;  %s2808_s0 = scalar_lea.vmem %s2768_s4, %s2495_s14  ;;  %s2271_s13 = smov 88   ;;  %vm828_vm10 = vcmask 64512  }
  0x7b   : > { %723 = vadd.xlane.f32.xlu0 %v722_v6  ;;  %813 = vmatpush.bf16.msra.mxu0 %v1916_v26  ;;  %v2014_v47 = vld [vmem:[%s2806_s1] ss:$0 sm:$0xff]  ;;  %s2272_s16 = smov 96   ;;  %s2273_s18 = smov 80   ;;  %vm905_vm11 = vcmask 1043456   ;;  %vm1317_vm12 = vcmask 130048  }
  0x7c   : > { %v2015_v52 = vld [vmem:[%s2807_s28] ss:$0 sm:$0xff]  ;;  %s2274_s20 = smov 112   ;;  %s2275_s12 = smov 72   ;;  %vm1320_vm13 = vcmask 195584  }
  0x7d   : > { %v2016_v57 = vld [vmem:[%s2808_s0] ss:$0 sm:$0xff]  ;;  %s2276_s30 = smov 120   ;;  %s2277_s17 = smov 104  }
  0x7e   : > { %s2278_s27 = smov 64   ;;  %s2279_s24 = smov 56  }
  0x7f   : > { %814 = vmatpush.bf16.msra.mxu0 %v1915_v28  ;;  %s2280_s1 = smov 48   ;;  %s2281_s28 = smov 40  }
  0x80   : > { %v2023_v10 = vpop.eup %2022  ;;  %s2282_s2 = smov 8   ;;  %s2283_s25 = smov 16  }
  0x81   : > { %v729_v11 = vmul.f32 32.0, %v2023_v10  ;;  %vm733_vm3 = vweird.f32 %v2023_v10  ;;  %s2284_s0 = smov 24   ;;  %p1906_p10 = scmp.ne.s32.totalorder %s2386_s22, 1 }
  0x83   : > { %726 = vadd.xlane.f32.xlu0 %v725_v8  ;;  %v730_v12 = vsub.f32 1.0, %v729_v11 }
  0x85   : > { %v731_v13 = vmul.f32 %v2023_v10, %v730_v12 }
  0x87   : > { %v732_v14 = vadd.f32 %v2023_v10, %v731_v13 }
  0x89   : > { %v2552_v15 = vsel %vm733_vm3, %v2023_v10, %v732_v14 }
  0xee   : > { %v724_v16 = vpop.xlane.xlu0 %723 }
  0xef   : > { %v735_v17 = vmul.f32 %v2552_v15, %v724_v16 }
  0xf1   : > { %v737_v18 = vsub.f32 %v2544_v5, %v735_v17 }
  0xf3   : > { %v739_v19 = vmul.f32 %v737_v18, %v737_v18 }
  0xf5   : > { %v741_v20 = vsel %vm721_vm2, %v739_v19, 0.0 }
  0xf6   : > { %742 = vadd.xlane.f32.xlu1 %v741_v20  ;;  %v727_v21 = vpop.xlane.xlu0 %726 }
  0xf7   : > { %v736_v22 = vmul.f32 %v2552_v15, %v727_v21 }
  0xf9   : > { %v738_v23 = vsub.f32 %v2548_v7, %v736_v22 }
  0xfb   : > { %v740_v24 = vmul.f32 %v738_v23, %v738_v23 }
  0xfd   : > { %v744_v25 = vsel %vm721_vm2, %v740_v24, 0.0 }
  0xfe   : > { %745 = vadd.xlane.f32.xlu1 %v744_v25 }
 0x169   : > { %v743_v27 = vpop.xlane.xlu1 %742 }
 0x16a   : > { %v747_v29 = vmul.f32 %v743_v27, %v2552_v15 }
 0x16c   : > { %v749_v30 = vadd.f32 1e-05, %v747_v29 }
 0x16e   : > { %2024 = vrsqrt.f32 %v749_v30  ;;  %vm757_vm5 = vweird.f32 %v749_v30 }
 0x171   : > { %v746_v31 = vpop.xlane.xlu1 %745 }
 0x172   : > { %v748_v32 = vmul.f32 %v746_v31, %v2552_v15 }
 0x174   : > { %v2025_v33 = vpop.eup %2024  ;;  %v750_v34 = vadd.f32 1e-05, %v748_v32 }
 0x175   : > { %v752_v35 = vmul.f32 %v2025_v33, %v749_v30  ;;  %vm758_vm4 = vweird.f32 %v2025_v33  ;;  %v718_v30 = vld [vmem:[#allocation3] sm:$0xff] }
 0x176   : > { %2026 = vrsqrt.f32 %v750_v34  ;;  %vm759_vm6 = vmor %vm757_vm5, %vm758_vm4  ;;  %vm767_vm8 = vweird.f32 %v750_v34 }
 0x177   : > { %v753_v36 = vmul.f32 %v2025_v33, %v752_v35 }
 0x179   : > { %v754_v37 = vmul.f32 0.5, %v753_v36 }
 0x17b   : > { %v755_v38 = vsub.f32 1.5, %v754_v37 }
 0x17c   : > { %v2027_v39 = vpop.eup %2026 }
 0x17d   : > { %v756_v40 = vmul.f32 %v2025_v33, %v755_v38  ;;  %v762_v41 = vmul.f32 %v2027_v39, %v750_v34  ;;  %vm768_vm7 = vweird.f32 %v2027_v39 }
 0x17e   : > { %vm769_vm9 = vmor %vm767_vm8, %vm768_vm7 }
 0x17f   : > { %v763_v42 = vmul.f32 %v2027_v39, %v762_v41  ;;  %v760_v43 = vsel %vm759_vm6, %v2025_v33, %v756_v40 }
 0x180   : > { %v771_v46 = vmul.f32 %v760_v43, %v737_v18 }
 0x181   : > { %v764_v44 = vmul.f32 0.5, %v763_v42 }
 0x182   : > { %v776_v51 = vmul.f32 %v2014_v47, %v771_v46 }
 0x183   : > { %v765_v45 = vsub.f32 1.5, %v764_v44 }
 0x184   : > { %v781_v54 = vadd.f32 %v2015_v52, %v776_v51 }
 0x185   : > { %v766_v48 = vmul.f32 %v2027_v39, %v765_v45 }
 0x187   : > { %v770_v49 = vsel %vm769_vm9, %v2027_v39, %v766_v48 }
 0x188   : > { %v772_v50 = vmul.f32 %v770_v49, %v738_v23 }
 0x18a   : > { %v777_v53 = vmul.f32 %v2014_v47, %v772_v50 }
 0x18c   : > { %v782_v55 = vadd.f32 %v2015_v52, %v777_v53 }
 0x18e   : > { %v783_v56 = vpack.c.bf16 %v782_v55, %v781_v54 }
 0x190   : > { %1852 = vmatmul.msk.bf16.vlgmr.msra.gmra.mxu0 %vm721_vm2, %v783_v56 }
 0x20d   : > { %v816_v58 = vpop.f32.mrf.mxu0 }
 0x20e   : > { %v817_v59 = vadd.f32 %v2016_v57, %v816_v58 }
 0x210   : > { %v821_v60 = vpack.c.bf16 %v817_v59, %v817_v59 }
 0x212   : > { %v824_v61 = vunpack.c.l.b16 %v821_v60 }
 0x214   : > { %v2574_v62 = vpack.c.b16 %v824_v61, %v824_v61 }
 0x215   : > { %v818_v63 = vpop.f32.mrf.mxu0 }
 0x216   : > { %v819_v0 = vadd.f32 %v2016_v57, %v818_v63  ;;  %945 = vrot.lane.b32.xlu0 %v2574_v62, %s2271_s13  ;;  %826 = vrot.lane.b32.xlu2 %v2574_v62, %s2272_s16 }
 0x218   : > { %v822_v1 = vpack.c.bf16 %v819_v0, %v819_v0 }
 0x21a   : > { %v849_v2 = vunpack.c.l.b16 %v822_v1 }
 0x21c   : > { %v2578_v3 = vpack.c.b16 %v849_v2, %v849_v2 }
 0x21e   : > { %968 = vrot.lane.b32.xlu1 %v2578_v3, %s2271_s13  ;;  %1084 = vrot.lane.b32.xlu0 %v2578_v3, %s2273_s18 }
 0x21f   : > { %851 = vrot.lane.b32.xlu2 %v2578_v3, %s2272_s16  ;;  %s2809_s16 = scalar_lea.vmem %s2770_s6, %s2495_s14 }
 0x226   : > { %1082 = vrot.lane.b32.xlu1 %v2578_v3, %s2274_s20  ;;  %1177 = vrot.lane.b32.xlu0 %v2574_v62, %s2275_s12 }
 0x227   : > { %943 = vrot.lane.b32.xlu2 %v2574_v62, %s2276_s30 }
 0x22e   : > { %1175 = vrot.lane.b32.xlu1 %v2574_v62, %s2277_s17  ;;  %1198 = vrot.lane.b32.xlu0 %v2578_v3, %s2277_s17  ;;  %s2812_s17 = sld [smem:[#allocation31_spill]] (!%p1906_p10) }
 0x22f   : > { %966 = vrot.lane.b32.xlu2 %v2578_v3, %s2276_s30 }
 0x237   : > { %1061 = vrot.lane.b32.xlu2 %v2574_v62, %s2273_s18 }
 0x23f   : > { %1059 = vrot.lane.b32.xlu2 %v2574_v62, %s2274_s20  ;;  %s2811_s20 = sld [smem:[#allocation30_spill]] (!%p1906_p10) }
 0x247   : > { %1200 = vrot.lane.b32.xlu2 %v2578_v3, %s2275_s12 }
 0x270   : > { %v827_v4 = vpop.permute.xlu2 %826 }
 0x271   : > { %v833_v6 = vsel %vm828_vm10, %v827_v4, 0 }
 0x272   : > { %842 = vmatpush.bf16.xpose.msra.mxu1 %v833_v6 }
 0x279   : > { %v852_v8 = vpop.permute.xlu2 %851  ;;  %1853 = vmatmul.msk.bf16.vlgmr.msra.gmra.mxu1 %vm828_vm10, %v821_v60 }
 0x27a   : > { %v857_v9 = vsel %vm828_vm10, %v852_v8, 0 }
 0x27b   : > { %866 = vmatpush.bf16.xpose.msra.mxu2 %v857_v9 }
 0x281   : > { %v944_v10 = vpop.permute.xlu2 %943 }
 0x282   : > { %1854 = vmatmul.msk.bf16.vlgmr.msra.gmra.mxu2 %vm828_vm10, %v822_v1 }
 0x288   : > { %v946_v11 = vpop.permute.xlu0 %945 }
 0x289   : > { %v967_v12 = vpop.permute.xlu2 %966  ;;  %v951_v13 = vsel %vm828_vm10, %v946_v11, 0 }
 0x28a   : > { %960 = vmatpush.bf16.xpose.msrb.mxu0 %v951_v13 }
 0x290   : > { %v969_v14 = vpop.permute.xlu1 %968  ;;  %v1085_v16 = vpop.permute.xlu0 %1084 }
 0x291   : > { %v1090_v17 = vsel %vm828_vm10, %v1085_v16, 0  ;;  %v1062_v18 = vpop.permute.xlu2 %1061  ;;  %1857 = vmatmul.msk.bf16.vlgmr.msrb.gmra.mxu0 %vm828_vm10, %v944_v10  ;;  %v974_v19 = vsel %vm828_vm10, %v969_v14, 0 }
 0x292   : > { %v1067_v20 = vsel %vm828_vm10, %v1062_v18, 0  ;;  %983 = vmatpush.bf16.xpose.msrb.mxu1 %v974_v19 }
 0x293   : > { %1076 = vmatpush.bf16.xpose.msra.mxu0 %v1067_v20 }
 0x298   : > { %v1178_v21 = vpop.permute.xlu0 %1177  ;;  %v1083_v26 = vpop.permute.xlu1 %1082 }
 0x299   : > { %v1183_v22 = vsel %vm828_vm10, %v1178_v21, 0  ;;  %v1060_v23 = vpop.permute.xlu2 %1059  ;;  %1858 = vmatmul.msk.bf16.vlgmr.msrb.gmra.mxu1 %vm828_vm10, %v967_v12 }
 0x29a   : > { %1099 = vmatpush.bf16.xpose.msra.mxu1 %v1090_v17 }
 0x29b   : > { %1192 = vmatpush.bf16.xpose.msrb.mxu0 %v1183_v22 }
 0x2a0   : > { %v1176_v27 = vpop.permute.xlu1 %1175  ;;  %v1199_v28 = vpop.permute.xlu0 %1198 }
 0x2a1   : > { %v1201_v24 = vpop.permute.xlu2 %1200  ;;  %1861 = vmatmul.msk.bf16.vlgmr.msra.gmra.mxu0 %vm828_vm10, %v1060_v23 }
 0x2a2   : > { %v1206_v25 = vsel %vm828_vm10, %v1201_v24, 0 }
 0x2a3   : > { %1215 = vmatpush.bf16.xpose.msrb.mxu1 %v1206_v25 }
 0x2a9   : > { %1862 = vmatmul.msk.bf16.vlgmr.msra.gmra.mxu1 %vm828_vm10, %v1083_v26 }
 0x2b1   : > { %1865 = vmatmul.msk.bf16.vlgmr.msrb.gmra.mxu0 %vm828_vm10, %v1176_v27 }
 0x2b9   : > { %1866 = vmatmul.msk.bf16.vlgmr.msrb.gmra.mxu1 %vm828_vm10, %v1199_v28 }
 0x2f6   : > { %v844_v29 = vpop.f32.mrf.mxu1 }
 0x2f7   : > { %v872_v31 = vmul.f32 0.35355338, %v844_v29 }
 0x2f9   : > { %v874_v32 = vadd.f32 %v872_v31, %v718_v30 }
 0x2fb   : > { %v876_v33 = vsel %vm828_vm10, %v874_v32, -inf }
 0x2fc   : > { %877 = vmax.xlane.f32.xlu2 %v876_v33 }
 0x2fe   : > { %v846_v34 = vpop.f32.mrf.mxu1 }
 0x305   : > { %v868_v35 = vpop.f32.mrf.mxu2 }
 0x306   : > { %v873_v36 = vmul.f32 0.35355338, %v868_v35 }
 0x308   : > { %v875_v37 = vadd.f32 %v873_v36, %v718_v30 }
 0x30a   : > { %v879_v38 = vsel %vm828_vm10, %v875_v37, -inf }
 0x30b   : > { %880 = vmax.xlane.f32.xlu1 %v879_v38 }
 0x30d   : > { %v870_v39 = vpop.f32.mrf.mxu2 }
 0x30e   : > { %v962_v40 = vpop.f32.mrf.mxu0 }
 0x30f   : > { %v989_v41 = vmul.f32 0.35355338, %v962_v40 }
 0x311   : > { %v991_v42 = vadd.f32 %v989_v41, %v718_v30 }
 0x313   : > { %v993_v43 = vsel %vm828_vm10, %v991_v42, -inf }
 0x314   : > { %922 = vrot.lane.b32.xlu2 %v2578_v3, %s2278_s27  ;;  %994 = vmax.xlane.f32.xlu0 %v993_v43 }
 0x316   : > { %v964_v44 = vpop.f32.mrf.mxu0  ;;  %v985_v45 = vpop.f32.mrf.mxu1 }
 0x317   : > { %v990_v54 = vmul.f32 0.35355338, %v985_v45 }
 0x319   : > { %v992_v56 = vadd.f32 %v990_v54, %v718_v30 }
 0x31b   : > { %v996_v58 = vsel %vm828_vm10, %v992_v56, -inf }
 0x31c   : > { %1038 = vrot.lane.b32.xlu2 %v2578_v3, %s2279_s24 }
 0x31e   : > { %v987_v46 = vpop.f32.mrf.mxu1  ;;  %v1078_v47 = vpop.f32.mrf.mxu0 }
 0x31f   : > { %v1105_v59 = vmul.f32 0.35355338, %v1078_v47 }
 0x321   : > { %v1107_v63 = vadd.f32 %v1105_v59, %v718_v30 }
 0x323   : > { %v1109_v1 = vsel %vm828_vm10, %v1107_v63, -inf }
 0x324   : > { %900 = vrot.lane.b32.xlu1 %v2574_v62, %s2278_s27 }
 0x326   : > { %v1080_v48 = vpop.f32.mrf.mxu0  ;;  %v1101_v49 = vpop.f32.mrf.mxu1 }
 0x327   : > { %v1106_v61 = vmul.f32 0.35355338, %v1101_v49 }
 0x328   : > { %1017 = vrot.lane.b32.xlu0 %v2574_v62, %s2279_s24 }
 0x329   : > { %v1108_v2 = vadd.f32 %v1106_v61, %v718_v30 }
 0x32b   : > { %v1112_v6 = vsel %vm828_vm10, %v1108_v2, -inf }
 0x32e   : > { %v1103_v50 = vpop.f32.mrf.mxu1  ;;  %v1194_v51 = vpop.f32.mrf.mxu0 }
 0x32f   : > { %v1221_v4 = vmul.f32 0.35355338, %v1194_v51 }
 0x331   : > { %v1223_v8 = vadd.f32 %v1221_v4, %v718_v30 }
 0x333   : > { %v1225_v9 = vsel %vm828_vm10, %v1223_v8, -inf }
 0x336   : > { %v1196_v52 = vpop.f32.mrf.mxu0  ;;  %v1217_v53 = vpop.f32.mrf.mxu1 }
 0x337   : > { %v1222_v57 = vmul.f32 0.35355338, %v1217_v53 }
 0x339   : > { %v2616_v60 = vadd.f32 %v1222_v57, %v718_v30 }
 0x33b   : > { %v1228_v0 = vsel %vm828_vm10, %v2616_v60, -inf }
 0x33e   : > { %v1219_v55 = vpop.f32.mrf.mxu1 }
 0x345   : > { %997 = vmax.xlane.f32.xlu2 %v996_v58 }
 0x34d   : > { %1229 = vmax.xlane.f32.xlu2 %v1228_v0 }
 0x34e   : > { %1110 = vmax.xlane.f32.xlu1 %v1109_v1 }
 0x352   : > { %1113 = vmax.xlane.f32.xlu0 %v1112_v6 }
 0x35a   : > { %1226 = vmax.xlane.f32.xlu0 %v1225_v9 }
 0x36f   : > { %v878_v10 = vpop.xlane.xlu2 %877 }
 0x370   : > { %v882_v11 = vsub.f32 %v874_v32, %v878_v10 }
 0x372   : > { %v884_v12 = vmul.f32 1.442695, %v882_v11 }
 0x374   : > { %2028 = vpow2.f32 %v884_v12 }
 0x377   : > { %v923_v24 = vpop.permute.xlu2 %922 }
 0x378   : > { %v928_v28 = vsel %vm905_vm11, %v923_v24, 0 }
 0x37a   : > { %v2623_v13 = vpop.eup %2028 }
 0x37b   : > { %v888_v14 = vsel %vm828_vm10, %v2623_v13, 0.0 }
 0x37c   : > { %889 = vadd.xlane.f32.xlu2 %v888_v14 }
 0x37e   : > { %v881_v16 = vpop.xlane.xlu1 %880 }
 0x37f   : > { %v883_v19 = vsub.f32 %v875_v37, %v881_v16  ;;  %v1039_v32 = vpop.permute.xlu2 %1038 }
 0x380   : > { %v1044_v61 = vsel %vm905_vm11, %v1039_v32, 0 }
 0x381   : > { %v886_v21 = vmul.f32 1.442695, %v883_v19 }
 0x387   : > { %v995_v17 = vpop.xlane.xlu0 %994 }
 0x388   : > { %v999_v18 = vsub.f32 %v991_v42, %v995_v17 }
 0x38a   : > { %v1001_v20 = vmul.f32 1.442695, %v999_v18 }
 0x38c   : > { %2030 = vpow2.f32 %v1001_v20 }
 0x38d   : > { %2032 = vpow2.f32 %v886_v21 }
 0x392   : > { %v2627_v22 = vpop.eup %2030 }
 0x393   : > { %v1005_v23 = vsel %vm828_vm10, %v2627_v22, 0.0  ;;  %v2634_v27 = vpop.eup %2032 }
 0x394   : > { %1006 = vadd.xlane.f32.xlu0 %v1005_v23  ;;  %1154 = vrot.lane.b32.xlu2 %v2578_v3, %s2280_s1  ;;  %v891_v31 = vsel %vm828_vm10, %v2634_v27, 0.0 }
 0x396   : > { %v901_v25 = vpop.permute.xlu1 %900 }
 0x397   : > { %v907_v26 = vsel %vm905_vm11, %v901_v25, 0 }
 0x398   : > { %916 = vmatpush.bf16.msra.mxu3 %v907_v26 }
 0x39a   : > { %v1018_v29 = vpop.permute.xlu0 %1017 }
 0x39b   : > { %v1023_v30 = vsel %vm905_vm11, %v1018_v29, 0 }
 0x39c   : > { %937 = vmatpush.bf16.msrb.mxu3 %v928_v28  ;;  %1032 = vmatpush.bf16.msrb.mxu2 %v1023_v30 }
 0x39d   : > { %892 = vadd.xlane.f32.xlu0 %v891_v31 }
 0x3b8   : > { %v998_v33 = vpop.xlane.xlu2 %997 }
 0x3b9   : > { %v1000_v34 = vsub.f32 %v992_v56, %v998_v33 }
 0x3bb   : > { %v1003_v35 = vmul.f32 1.442695, %v1000_v34 }
 0x3bd   : > { %2034 = vpow2.f32 %v1003_v35 }
 0x3c0   : > { %v1230_v53 = vpop.xlane.xlu2 %1229 }
 0x3c1   : > { %v1111_v36 = vpop.xlane.xlu1 %1110  ;;  %v1232_v56 = vsub.f32 %v2616_v60, %v1230_v53 }
 0x3c2   : > { %v1115_v37 = vsub.f32 %v1107_v63, %v1111_v36 }
 0x3c3   : > { %v2035_v38 = vpop.eup %2034  ;;  %v1235_v59 = vmul.f32 1.442695, %v1232_v56 }
 0x3c4   : > { %v1117_v39 = vmul.f32 1.442695, %v1115_v37  ;;  %v1008_v40 = vsel %vm828_vm10, %v2035_v38, 0.0 }
 0x3c5   : > { %v1114_v41 = vpop.xlane.xlu0 %1113  ;;  %1009 = vadd.xlane.f32.xlu1 %v1008_v40 }
 0x3c6   : > { %2036 = vpow2.f32 %v1117_v39  ;;  %v1116_v42 = vsub.f32 %v1108_v2, %v1114_v41 }
 0x3c8   : > { %v1119_v43 = vmul.f32 1.442695, %v1116_v42 }
 0x3ca   : > { %2038 = vpow2.f32 %v1119_v43 }
 0x3cc   : > { %v2641_v44 = vpop.eup %2036 }
 0x3cd   : > { %v1227_v45 = vpop.xlane.xlu0 %1226  ;;  %v1121_v46 = vsel %vm828_vm10, %v2641_v44, 0.0 }
 0x3ce   : > { %v1231_v47 = vsub.f32 %v1223_v8, %v1227_v45  ;;  %1122 = vadd.xlane.f32.xlu2 %v1121_v46 }
 0x3d0   : > { %v2039_v48 = vpop.eup %2038  ;;  %v1233_v49 = vmul.f32 1.442695, %v1231_v47 }
 0x3d1   : > { %v1124_v50 = vsel %vm828_vm10, %v2039_v48, 0.0 }
 0x3d2   : > { %2040 = vpow2.f32 %v1233_v49  ;;  %1125 = vadd.xlane.f32.xlu0 %v1124_v50 }
 0x3d8   : > { %v2646_v51 = vpop.eup %2040 }
 0x3d9   : > { %v1237_v52 = vsel %vm828_vm10, %v2646_v51, 0.0 }
 0x3da   : > { %1238 = vadd.xlane.f32.xlu0 %v1237_v52 }
 0x3de   : > { %1133 = vrot.lane.b32.xlu1 %v2574_v62, %s2280_s1 }
 0x3e6   : > { %1270 = vrot.lane.b32.xlu2 %v2578_v3, %s2281_s28 }
 0x3ee   : > { %1249 = vrot.lane.b32.xlu0 %v2574_v62, %s2281_s28 }
 0x3ef   : > { %v890_v54 = vpop.xlane.xlu2 %889 }
 0x3f0   : > { %2042 = vrcp.f32 %v890_v54 }
 0x3f1   : > { %2044 = vpow2.f32 %v1235_v59 }
 0x3f6   : > { %v2043_v55 = vpop.eup %2042 }
 0x3f7   : > { %v896_v57 = vmul.f32 %v2043_v55, %v2623_v13  ;;  %v2045_v63 = vpop.eup %2044  ;;  %v1155_v8 = vpop.permute.xlu2 %1154 }
 0x3f8   : > { %v1240_v0 = vsel %vm828_vm10, %v2045_v63, 0.0  ;;  %v1160_v10 = vsel %vm905_vm11, %v1155_v8, 0 }
 0x3f9   : > { %v898_v58 = vpack.c.bf16 %v896_v57, %v896_v57  ;;  %v1918_v57 = vld [vmem:[%s2510_s15 + $0x8] sm:$0xff] }
 0x3fa   : > { %1353 = vmatpush.bf16.msra.mxu0 %v1918_v57 }
 0x3fb   : > { %1855 = vmatmul.msk.bf16.vlgmr.msra.gmra.mxu3 %vm828_vm10, %v898_v58  ;;  %v1917_v58 = vld [vmem:[%s2510_s15] sm:$0xff] }
 0x3fc   : > { %1053 = vmatpush.bf16.msra.mxu3 %v1044_v61 }
 0x3fe   : > { %1354 = vmatpush.bf16.msra.mxu0 %v1917_v58 }
 0x407   : > { %v1007_v3 = vpop.xlane.xlu0 %1006 }
 0x408   : > { %2046 = vrcp.f32 %v1007_v3  ;;  %1241 = vadd.xlane.f32.xlu1 %v1240_v0 }
 0x40e   : > { %v2047_v62 = vpop.eup %2046 }
 0x40f   : > { %v1013_v1 = vmul.f32 %v2047_v62, %v2627_v22 }
 0x410   : > { %v893_v60 = vpop.xlane.xlu0 %892 }
 0x411   : > { %2048 = vrcp.f32 %v893_v60  ;;  %v1015_v2 = vpack.c.bf16 %v1013_v1, %v1013_v1 }
 0x413   : > { %1859 = vmatmul.msk.bf16.vlgmr.msrb.gmra.mxu2 %vm828_vm10, %v1015_v2 }
 0x417   : > { %v2049_v4 = vpop.eup %2048 }
 0x418   : > { %v897_v6 = vmul.f32 %v2049_v4, %v2634_v27 }
 0x41a   : > { %v899_v9 = vpack.c.bf16 %v897_v6, %v897_v6 }
 0x41c   : > { %1856 = vmatmul.msk.bf16.vlgmr.msrb.gmra.mxu3 %vm828_vm10, %v899_v9 }
 0x41d   : > { %1169 = vmatpush.bf16.msrb.mxu3 %v1160_v10 }
 0x438   : > { %v1010_v11 = vpop.xlane.xlu1 %1009 }
 0x439   : > { %2050 = vrcp.f32 %v1010_v11 }
 0x43f   : > { %v2051_v12 = vpop.eup %2050 }
 0x440   : > { %v1014_v13 = vmul.f32 %v2051_v12, %v2035_v38 }
 0x441   : > { %v1123_v14 = vpop.xlane.xlu2 %1122 }
 0x442   : > { %v1016_v16 = vpack.c.bf16 %v1014_v13, %v1014_v13  ;;  %2052 = vrcp.f32 %v1123_v14  ;;  %v2017_v13 = vld [vmem:[%s2809_s16] ss:$0 sm:$0xff] }
 0x444   : > { %1860 = vmatmul.msk.bf16.vlgmr.msra.gmra.mxu3 %vm828_vm10, %v1016_v16 }
 0x445   : > { %v1126_v17 = vpop.xlane.xlu0 %1125 }
 0x446   : > { %2054 = vrcp.f32 %v1126_v17 }
 0x448   : > { %v2053_v20 = vpop.eup %2052 }
 0x449   : > { %v1271_v18 = vpop.permute.xlu2 %1270  ;;  %v1129_v23 = vmul.f32 %v2053_v20, %v2641_v44 }
 0x44a   : > { %v1276_v19 = vsel %vm905_vm11, %v1271_v18, 0 }
 0x44b   : > { %1285 = vmatpush.bf16.msra.mxu3 %v1276_v19  ;;  %v1131_v27 = vpack.c.bf16 %v1129_v23, %v1129_v23 }
 0x44c   : > { %v2055_v21 = vpop.eup %2054 }
 0x44d   : > { %v1130_v22 = vmul.f32 %v2055_v21, %v2039_v48  ;;  %v1239_v28 = vpop.xlane.xlu0 %1238 }
 0x44e   : > { %2056 = vrcp.f32 %v1239_v28 }
 0x44f   : > { %v1132_v26 = vpack.c.bf16 %v1130_v22, %v1130_v22 }
 0x450   : > { %v1134_v24 = vpop.permute.xlu1 %1133 }
 0x451   : > { %v1139_v25 = vsel %vm905_vm11, %v1134_v24, 0 }
 0x452   : > { %1148 = vmatpush.bf16.msra.mxu2 %v1139_v25 }
 0x454   : > { %1864 = vmatmul.msk.bf16.vlgmr.msrb.gmra.mxu3 %vm828_vm10, %v1132_v26  ;;  %v2057_v29 = vpop.eup %2056 }
 0x455   : > { %1863 = vmatmul.msk.bf16.vlgmr.msra.gmra.mxu2 %vm828_vm10, %v1131_v27  ;;  %v1245_v30 = vmul.f32 %v2057_v29, %v2646_v51 }
 0x457   : > { %v1247_v33 = vpack.c.bf16 %v1245_v30, %v1245_v30 }
 0x460   : > { %v1250_v31 = vpop.permute.xlu0 %1249 }
 0x461   : > { %v1255_v32 = vsel %vm905_vm11, %v1250_v31, 0  ;;  %v1920_v31 = vld [vmem:[%s2523_s26 + $0x8] sm:$0xff] }
 0x462   : > { %1264 = vmatpush.bf16.msrb.mxu2 %v1255_v32  ;;  %1449 = vmatpush.bf16.msra.mxu1 %v1920_v31 }
 0x465   : > { %1867 = vmatmul.msk.bf16.vlgmr.msrb.gmra.mxu2 %vm828_vm10, %v1247_v33 }
 0x47b   : > { %v1242_v34 = vpop.xlane.xlu1 %1241 }
 0x47c   : > { %2058 = vrcp.f32 %v1242_v34 }
 0x47e   : > { %v918_v35 = vpop.f32.mrf.mxu3 }
 0x482   : > { %v2059_v36 = vpop.eup %2058 }
 0x483   : > { %v1246_v37 = vmul.f32 %v2059_v36, %v2045_v63 }
 0x485   : > { %v1248_v38 = vpack.c.bf16 %v1246_v37, %v1246_v37 }
 0x486   : > { %v920_v39 = vpop.f32.mrf.mxu3 }
 0x487   : > { %1868 = vmatmul.msk.bf16.vlgmr.msra.gmra.mxu3 %vm828_vm10, %v1248_v38 }
 0x496   : > { %v1034_v40 = vpop.f32.mrf.mxu2 }
 0x49e   : > { %v1036_v42 = vpop.f32.mrf.mxu2 }
 0x49f   : > { %v939_v41 = vpop.f32.mrf.mxu3 }
 0x4a7   : > { %v941_v43 = vpop.f32.mrf.mxu3 }
 0x4c7   : > { %v1055_v44 = vpop.f32.mrf.mxu3 }
 0x4c8   : > { %v1999_v45 = vpack.i.bf16 %v1055_v44, %v1034_v40 }
 0x4ca   : > { %2000 = vrot.lane.b32.xlu0 %v1999_v45, %s2282_s2 }
 0x4cf   : > { %v1057_v46 = vpop.f32.mrf.mxu3 }
 0x4d7   : > { %v1171_v47 = vpop.f32.mrf.mxu3 }
 0x4d8   : > { %v1150_v48 = vpop.f32.mrf.mxu2 }
 0x4d9   : > { %v2004_v49 = vpack.i.bf16 %v1171_v47, %v1150_v48 }
 0x4db   : > { %2005 = vrot.lane.b32.xlu2 %v2004_v49, %s2283_s25 }
 0x4df   : > { %v1173_v50 = vpop.f32.mrf.mxu3 }
 0x4e0   : > { %v1152_v51 = vpop.f32.mrf.mxu2 }
 0x4e1   : > { %v2018_v51 = vld [vmem:[%s569_s21] ss:$0 sm:$0xff] }
 0x4e8   : > { %v1266_v52 = vpop.f32.mrf.mxu2 }
 0x4f0   : > { %v1268_v53 = vpop.f32.mrf.mxu2 }
 0x50a   : > { %v1287_v54 = vpop.f32.mrf.mxu3 }
 0x50b   : > { %v2009_v55 = vpack.i.bf16 %v1287_v54, %v1266_v52 }
 0x50d   : > { %2010 = vrot.lane.b32.xlu0 %v2009_v55, %s2284_s0  ;;  %v2019_v55 = vld [vmem:[%s670_s23] ss:$0 sm:$0xff] }
 0x512   : > { %v1289_v56 = vpop.f32.mrf.mxu3 }
 0x535   : > { %v2006_v3 = vpop.permute.xlu2 %2005 }
 0x536   : > { %v2008_v1 = vunpack.i.h.bf16 %v2006_v3  ;;  %v2007_v60 = vunpack.i.l.bf16 %v2006_v3  ;;  %v2020_v3 = vld [vmem:[%s678_s29] ss:$0 sm:$0xff] }
 0x53c   : > { %v2001_v59 = vpop.permute.xlu0 %2000 }
 0x53d   : > { %v2003_v61 = vunpack.i.h.bf16 %v2001_v59  ;;  %v2002_v63 = vunpack.i.l.bf16 %v2001_v59 }
 0x53f   : > { %v1316_v0 = vsel %vm828_vm10, %v939_v41, %v2003_v61  ;;  %v1315_v62 = vsel %vm828_vm10, %v918_v35, %v2002_v63  ;;  %v1919_v35 = vld [vmem:[%s2523_s26] sm:$0xff] }
 0x540   : > { %v1318_v8 = vsel %vm1317_vm12, %v1315_v62, %v2007_v60  ;;  %v1319_v9 = vsel %vm1317_vm12, %v1316_v0, %v2008_v1  ;;  %1450 = vmatpush.bf16.msra.mxu1 %v1919_v35  ;;  %v1924_v0 = vld [vmem:[%s2537_s5 + $0x18] sm:$0xff]  ;;  %v1923_v60 = vld [vmem:[%s2537_s5 + $0x10] sm:$0xff] }
 0x541   : > { %1544 = vmatpush.bf16.msra.mxu2 %v1924_v0 }
 0x545   : > { %1545 = vmatpush.bf16.msra.mxu2 %v1923_v60 }
 0x57f   : > { %v2011_v2 = vpop.permute.xlu0 %2010 }
 0x580   : > { %v2013_v4 = vunpack.i.h.bf16 %v2011_v2  ;;  %v2012_v6 = vunpack.i.l.bf16 %v2011_v2 }
 0x582   : > { %v1321_v10 = vsel %vm1320_vm13, %v1318_v8, %v2012_v6  ;;  %v1322_v11 = vsel %vm1320_vm13, %v1319_v9, %v2013_v4  ;;  %v1922_v6 = vld [vmem:[%s2537_s5 + $0x8] sm:$0xff]  ;;  %vm1536_vm13 = vcmask 523264  }
 0x583   : > { %v1323_v12 = vpack.c.bf16 %v1322_v11, %v1321_v10  ;;  %1546 = vmatpush.bf16.msra.mxu2 %v1922_v6  ;;  %v1921_v10 = vld [vmem:[%s2537_s5] sm:$0xff] }
 0x585   : > { %1877 = vmatmul.msk.bf16.vlgmr.msra.gmra.mxu0 %vm721_vm2, %v1323_v12 }
 0x587   : > { %1547 = vmatpush.bf16.msra.mxu2 %v1921_v10 }
 0x602   : > { %v1356_v14 = vpop.f32.mrf.mxu0 }
 0x603   : > { %v1357_v16 = vadd.f32 %v2017_v13, %v1356_v14 }
 0x605   : > { %v2685_v17 = vadd.f32 %v1357_v16, %v2544_v5 }
 0x607   : > { %v1365_v18 = vsel %vm721_vm2, %v2685_v17, 0.0 }
 0x608   : > { %1366 = vadd.xlane.f32.xlu2 %v1365_v18 }
 0x60a   : > { %v1358_v19 = vpop.f32.mrf.mxu0 }
 0x60b   : > { %v1359_v20 = vadd.f32 %v2017_v13, %v1358_v19 }
 0x60d   : > { %v2690_v21 = vadd.f32 %v1359_v20, %v2548_v7 }
 0x60f   : > { %v1368_v22 = vsel %vm721_vm2, %v2690_v21, 0.0 }
 0x610   : > { %1369 = vadd.xlane.f32.xlu0 %v1368_v22 }
 0x67b   : > { %v1367_v23 = vpop.xlane.xlu2 %1366 }
 0x67c   : > { %v1371_v24 = vmul.f32 %v1367_v23, %v2552_v15 }
 0x67e   : > { %v1373_v5 = vsub.f32 %v2685_v17, %v1371_v24 }
 0x680   : > { %v1375_v25 = vmul.f32 %v1373_v5, %v1373_v5 }
 0x682   : > { %v1377_v26 = vsel %vm721_vm2, %v1375_v25, 0.0 }
 0x683   : > { %v1370_v27 = vpop.xlane.xlu0 %1369  ;;  %1378 = vadd.xlane.f32.xlu1 %v1377_v26 }
 0x684   : > { %v1372_v28 = vmul.f32 %v1370_v27, %v2552_v15 }
 0x686   : > { %v1374_v7 = vsub.f32 %v2690_v21, %v1372_v28 }
 0x688   : > { %v1376_v29 = vmul.f32 %v1374_v7, %v1374_v7 }
 0x68a   : > { %v1380_v30 = vsel %vm721_vm2, %v1376_v29, 0.0 }
 0x68b   : > { %1381 = vadd.xlane.f32.xlu1 %v1380_v30 }
 0x6f6   : > { %v1379_v32 = vpop.xlane.xlu1 %1378 }
 0x6f7   : > { %v1383_v33 = vmul.f32 %v1379_v32, %v2552_v15 }
 0x6f9   : > { %v1385_v34 = vadd.f32 1e-05, %v1383_v33 }
 0x6fb   : > { %2060 = vrsqrt.f32 %v1385_v34  ;;  %vm1393_vm15 = vweird.f32 %v1385_v34 }
 0x6fe   : > { %v1382_v36 = vpop.xlane.xlu1 %1381 }
 0x6ff   : > { %v1384_v37 = vmul.f32 %v1382_v36, %v2552_v15 }
 0x701   : > { %v2061_v38 = vpop.eup %2060  ;;  %v1386_v39 = vadd.f32 1e-05, %v1384_v37 }
 0x702   : > { %v1388_v40 = vmul.f32 %v2061_v38, %v1385_v34  ;;  %vm1394_vm14 = vweird.f32 %v2061_v38 }
 0x703   : > { %2062 = vrsqrt.f32 %v1386_v39  ;;  %vm1395_vm0 = vmor %vm1393_vm15, %vm1394_vm14  ;;  %vm1403_vm3 = vweird.f32 %v1386_v39 }
 0x704   : > { %v1389_v41 = vmul.f32 %v2061_v38, %v1388_v40 }
 0x706   : > { %v1390_v42 = vmul.f32 0.5, %v1389_v41  ;;  %v2021_v41 = vld [vmem:[%s686_s3] ss:$0 sm:$0xff] }
 0x708   : > { %v1391_v43 = vsub.f32 1.5, %v1390_v42 }
 0x709   : > { %v2063_v44 = vpop.eup %2062 }
 0x70a   : > { %v1392_v45 = vmul.f32 %v2061_v38, %v1391_v43  ;;  %v1398_v46 = vmul.f32 %v2063_v44, %v1386_v39  ;;  %vm1404_vm1 = vweird.f32 %v2063_v44 }
 0x70b   : > { %vm1405_vm4 = vmor %vm1403_vm3, %vm1404_vm1 }
 0x70c   : > { %v1399_v47 = vmul.f32 %v2063_v44, %v1398_v46  ;;  %v1396_v48 = vsel %vm1395_vm0, %v2061_v38, %v1392_v45 }
 0x70d   : > { %v1407_v52 = vmul.f32 %v1396_v48, %v1373_v5 }
 0x70e   : > { %v1400_v49 = vmul.f32 0.5, %v1399_v47 }
 0x70f   : > { %v1412_v56 = vmul.f32 %v2018_v51, %v1407_v52 }
 0x710   : > { %v1401_v50 = vsub.f32 1.5, %v1400_v49 }
 0x711   : > { %v1417_v59 = vadd.f32 %v2019_v55, %v1412_v56 }
 0x712   : > { %v1402_v53 = vmul.f32 %v2063_v44, %v1401_v50 }
 0x714   : > { %v1406_v54 = vsel %vm1405_vm4, %v2063_v44, %v1402_v53 }
 0x715   : > { %v1408_v57 = vmul.f32 %v1406_v54, %v1374_v7 }
 0x717   : > { %v1413_v58 = vmul.f32 %v2018_v51, %v1408_v57 }
 0x719   : > { %v1418_v61 = vadd.f32 %v2019_v55, %v1413_v58 }
 0x71b   : > { %v1419_v63 = vpack.c.bf16 %v1418_v61, %v1417_v59 }
 0x71d   : > { %1886 = vmatmul.msk.bf16.vlgmr.msra.gmra.mxu1 %vm721_vm2, %v1419_v63 }
 0x79a   : > { %v1452_v62 = vpop.f32.mrf.mxu1 }
 0x79b   : > { %v1453_v1 = vadd.f32 %v2020_v3, %v1452_v62 }
 0x79d   : > { %v1887_v2 = vmul.f32 -1.702, %v1453_v1 }
 0x79f   : > { %v1461_v4 = vmul.f32 1.442695, %v1887_v2 }
 0x7a1   : > { %2064 = vpow2.f32 %v1461_v4 }
 0x7a2   : > { %v1454_v8 = vpop.f32.mrf.mxu1 }
 0x7a3   : > { %v1455_v9 = vadd.f32 %v2020_v3, %v1454_v8 }
 0x7a5   : > { %v1888_v11 = vmul.f32 -1.702, %v1455_v9 }
 0x7a7   : > { %v2065_v12 = vpop.eup %2064  ;;  %v1463_v13 = vmul.f32 1.442695, %v1888_v11 }
 0x7a8   : > { %v1465_v14 = vadd.f32 1.0, %v2065_v12 }
 0x7a9   : > { %2066 = vpow2.f32 %v1463_v13 }
 0x7aa   : > { %2068 = vrcp.f32 %v1465_v14  ;;  %v1478_v26 = vand.u32 2147483648, %v1465_v14  ;;  %vm1472_vm6 = vweird.f32 %v1465_v14  ;;  %v1476_v27 = vand.u32 2147483647, %v1465_v14 }
 0x7ac   : > { %v1479_v32 = vor.u32 1.1754944e-38, %v1478_v26  ;;  %vm1477_vm9 = vcmp.eq.f32.partialorder %v1476_v27, 8.507059e+37 }
 0x7af   : > { %v2067_v16 = vpop.eup %2066 }
 0x7b0   : > { %v2069_v18 = vpop.eup %2068  ;;  %v1466_v19 = vadd.f32 1.0, %v2067_v16 }
 0x7b1   : > { %v1468_v20 = vmul.f32 %v2069_v18, %v1465_v14  ;;  %vm1473_vm5 = vweird.f32 %v2069_v18 }
 0x7b2   : > { %2070 = vrcp.f32 %v1466_v19  ;;  %vm1474_vm7 = vmor %vm1472_vm6, %vm1473_vm5  ;;  %v1493_v7 = vand.u32 2147483648, %v1466_v19  ;;  %v1491_v31 = vand.u32 2147483647, %v1466_v19  ;;  %vm1487_vm10 = vweird.f32 %v1466_v19 }
 0x7b3   : > { %v1469_v22 = vsub.f32 1.0, %v1468_v20 }
 0x7b4   : > { %v1494_v35 = vor.u32 1.1754944e-38, %v1493_v7  ;;  %vm1492_vm12 = vcmp.eq.f32.partialorder %v1491_v31, 8.507059e+37 }
 0x7b5   : > { %v1470_v23 = vmul.f32 %v2069_v18, %v1469_v22 }
 0x7b7   : > { %v1471_v5 = vadd.f32 %v2069_v18, %v1470_v23 }
 0x7b8   : > { %v2071_v24 = vpop.eup %2070 }
 0x7b9   : > { %v1483_v25 = vmul.f32 %v2071_v24, %v1466_v19  ;;  %v1475_v29 = vsel %vm1474_vm7, %v2069_v18, %v1471_v5  ;;  %vm1488_vm8 = vweird.f32 %v2071_v24 }
 0x7ba   : > { %v1480_v34 = vsel %vm1477_vm9, %v1479_v32, %v1475_v29  ;;  %vm1489_vm11 = vmor %vm1487_vm10, %vm1488_vm8 }
 0x7bb   : > { %v1484_v28 = vsub.f32 1.0, %v1483_v25  ;;  %v1497_v38 = vmul.f32 %v1480_v34, %v1453_v1 }
 0x7bd   : > { %v1485_v30 = vmul.f32 %v2071_v24, %v1484_v28 }
 0x7bf   : > { %v1486_v33 = vadd.f32 %v2071_v24, %v1485_v30 }
 0x7c1   : > { %v1490_v36 = vsel %vm1489_vm11, %v2071_v24, %v1486_v33 }
 0x7c2   : > { %v1495_v37 = vsel %vm1492_vm12, %v1494_v35, %v1490_v36 }
 0x7c3   : > { %v1498_v39 = vmul.f32 %v1495_v37, %v1455_v9 }
 0x7c5   : > { %v1499_v40 = vpack.c.bf16 %v1498_v39, %v1497_v38 }
 0x7c7   : > { %1905 = vmatmul.msk.bf16.vlgmr.msra.gmra.mxu2 %vm1536_vm13, %v1499_v40 }
 0x84a   : > { %v1549_v42 = vpop.f32.mrf.mxu2 }
 0x84b   : > { %v1550_v43 = vadd.f32 %v2021_v41, %v1549_v42 }
 0x84d   : > { %v1554_v44 = vadd.f32 %v1550_v43, %v2685_v17 }
 0x84f   : > { %1556 = vst.msk [vmem:[#allocation2] sm:$0xff] %vm721_vm2, %v1554_v44 }
 0x852   : > { %v1551_v45 = vpop.f32.mrf.mxu2 }
 0x853   : > { %v1552_v46 = vadd.f32 %v2021_v41, %v1551_v45  ;;  %1561 = sbr.rel (%p1906_p10) target bundleno = 2429 (0x97d), region = 101 }
 0x855   : > { %v1555_v47 = vadd.f32 %v1552_v46, %v2690_v21 }
 0x857   : > { %1557 = vst.msk [vmem:[#allocation2 + $0x8] sm:$0xff] %vm721_vm2, %v1555_v47 }
 0x858   : > { %v1564_v48 = vsel %vm721_vm2, %v1554_v44, 0.0  ;;  %v1567_v49 = vsel %vm721_vm2, %v1555_v47, 0.0  ;;  %v2072_v10 = vld [vmem:[%s2811_s20] ss:$0 sm:$0xff]  ;;  %v2285_v11 = vmov 8.0   ;;  %vm1643_vm6 = vcmask 1041409  }
 0x859   : > { %1565 = vadd.xlane.f32.xlu0 %v1564_v48  ;;  %v2073_v14 = vld [vmem:[%s2812_s17] ss:$0 sm:$0xff]  ;;  %vm1646_vm7 = vcmask 254976  }
 0x861   : > { %1568 = vadd.xlane.f32.xlu0 %v1567_v49 }
 0x8cc   : > { %v1566_v50 = vpop.xlane.xlu0 %1565 }
 0x8cd   : > { %v1570_v17 = vmul.f32 %v1566_v50, %v2552_v15 }
 0x8cf   : > { %v1572_v51 = vsub.f32 %v1554_v44, %v1570_v17 }
 0x8d1   : > { %v1574_v52 = vmul.f32 %v1572_v51, %v1572_v51 }
 0x8d3   : > { %v1576_v53 = vsel %vm721_vm2, %v1574_v52, 0.0 }
 0x8d4   : > { %1577 = vadd.xlane.f32.xlu1 %v1576_v53  ;;  %v1569_v21 = vpop.xlane.xlu0 %1568 }
 0x8d5   : > { %v1571_v54 = vmul.f32 %v1569_v21, %v2552_v15 }
 0x8d7   : > { %v1573_v55 = vsub.f32 %v1555_v47, %v1571_v54 }
 0x8d9   : > { %v1575_v56 = vmul.f32 %v1573_v55, %v1573_v55 }
 0x8db   : > { %v1579_v57 = vsel %vm721_vm2, %v1575_v56, 0.0 }
 0x8dc   : > { %1580 = vadd.xlane.f32.xlu1 %v1579_v57 }
 0x947   : > { %v1578_v58 = vpop.xlane.xlu1 %1577 }
 0x948   : > { %v1582_v59 = vmul.f32 %v1578_v58, %v2552_v15 }
 0x94a   : > { %v1584_v61 = vadd.f32 1e-05, %v1582_v59 }
 0x94c   : > { %2074 = vrsqrt.f32 %v1584_v61  ;;  %vm1592_vm15 = vweird.f32 %v1584_v61 }
 0x94f   : > { %v1581_v63 = vpop.xlane.xlu1 %1580 }
 0x950   : > { %v1583_v3 = vmul.f32 %v1581_v63, %v2552_v15 }
 0x952   : > { %v2075_v0 = vpop.eup %2074  ;;  %v1585_v62 = vadd.f32 1e-05, %v1583_v3 }
 0x953   : > { %v1587_v1 = vmul.f32 %v2075_v0, %v1584_v61  ;;  %vm1593_vm14 = vweird.f32 %v2075_v0 }
 0x954   : > { %2076 = vrsqrt.f32 %v1585_v62  ;;  %vm1594_vm0 = vmor %vm1592_vm15, %vm1593_vm14  ;;  %vm1602_vm3 = vweird.f32 %v1585_v62 }
 0x955   : > { %v1588_v60 = vmul.f32 %v2075_v0, %v1587_v1  ;;  %2078 = vrcp.f32 %v2285_v11 }
 0x957   : > { %v1589_v2 = vmul.f32 0.5, %v1588_v60 }
 0x959   : > { %v1590_v4 = vsub.f32 1.5, %v1589_v2 }
 0x95a   : > { %v2077_v6 = vpop.eup %2076 }
 0x95b   : > { %v1591_v8 = vmul.f32 %v2075_v0, %v1590_v4  ;;  %v1597_v9 = vmul.f32 %v2077_v6, %v1585_v62  ;;  %vm1603_vm1 = vweird.f32 %v2077_v6  ;;  %v2079_v22 = vpop.eup %2078 }
 0x95c   : > { %vm1604_vm4 = vmor %vm1602_vm3, %vm1603_vm1  ;;  %v1633_v26 = vmul.f32 8.0, %v2079_v22  ;;  %vm1637_vm5 = vweird.f32 %v2079_v22 }
 0x95d   : > { %v1595_v15 = vsel %vm1594_vm0, %v2075_v0, %v1591_v8  ;;  %v1598_v12 = vmul.f32 %v2077_v6, %v1597_v9 }
 0x95e   : > { %v1606_v13 = vmul.f32 %v1595_v15, %v1572_v51  ;;  %v1634_v30 = vsub.f32 1.0, %v1633_v26 }
 0x95f   : > { %v1599_v16 = vmul.f32 0.5, %v1598_v12 }
 0x960   : > { %v1611_v18 = vmul.f32 %v2072_v10, %v1606_v13  ;;  %v1635_v35 = vmul.f32 %v2079_v22, %v1634_v30 }
 0x961   : > { %v1600_v19 = vsub.f32 1.5, %v1599_v16 }
 0x962   : > { %v1616_v20 = vadd.f32 %v2073_v14, %v1611_v18  ;;  %v1636_v39 = vadd.f32 %v2079_v22, %v1635_v35 }
 0x963   : > { %v1601_v23 = vmul.f32 %v2077_v6, %v1600_v19 }
 0x964   : > { %v1618_v24 = vsel %vm721_vm2, %v1616_v20, 0.0  ;;  %v1638_v43 = vsel %vm1637_vm5, %v2079_v22, %v1636_v39 }
 0x965   : > { %v1619_v5 = vrot.slane %v1618_v24, 4  ;;  %v1605_v25 = vsel %vm1604_vm4, %v2077_v6, %v1601_v23 }
 0x966   : > { %v1607_v27 = vmul.f32 %v1605_v25, %v1573_v55 }
 0x967   : > { %v1620_v28 = vadd.f32 %v1619_v5, %v1618_v24 }
 0x968   : > { %v1612_v7 = vmul.f32 %v2072_v10, %v1607_v27 }
 0x969   : > { %v1621_v29 = vrot.slane %v1620_v28, 2 }
 0x96a   : > { %v1617_v31 = vadd.f32 %v2073_v14, %v1612_v7 }
 0x96b   : > { %v1622_v33 = vadd.f32 %v1621_v29, %v1620_v28 }
 0x96c   : > { %v1625_v32 = vsel %vm721_vm2, %v1617_v31, 0.0 }
 0x96d   : > { %v1626_v34 = vrot.slane %v1625_v32, 4  ;;  %v1623_v37 = vrot.slane %v1622_v33, 1 }
 0x96f   : > { %v1627_v36 = vadd.f32 %v1626_v34, %v1625_v32  ;;  %v1624_v41 = vadd.f32 %v1623_v37, %v1622_v33 }
 0x971   : > { %v1628_v38 = vrot.slane %v1627_v36, 2  ;;  %v1639_v45 = vmul.f32 %v1638_v43, %v1624_v41 }
 0x973   : > { %v1629_v40 = vadd.f32 %v1628_v38, %v1627_v36 }
 0x975   : > { %v1630_v42 = vrot.slane %v1629_v40, 1 }
 0x977   : > { %v1631_v44 = vadd.f32 %v1630_v42, %v1629_v40 }
 0x979   : > { %v1640_v46 = vmul.f32 %v1638_v43, %v1631_v44 }
 0x97b   : > { %v1644_v47 = vsel %vm1643_vm6, %v1640_v46, %v1639_v45 }
 0x97c   : > { %1647 = vst.msk [vmem:[#allocation10] sm:$0x3] %vm1646_vm7, %v1644_v47 }
 0x97d PF: > { %p1946_p5 = scmp.eq.s32.totalorder %s2386_s22, 1  ;;  %s2286_s27 = smov [#allocation10]  }
 0x97e   : > { %s1654_s24 = sshll.u32 %s2286_s27, 4  ;;  %s2813_s2 = sld [smem:[#allocation32_spill]]  ;;  %s1655_s24 = int_to_ptr.vmem [resolvable:$true] %s1654_s24 }
 0x984   : > { %s1656_s25 = sshll.u32 %s2813_s2, 4  ;;  %s1657_s25 = int_to_ptr.hbm [resolvable:$true] %s1656_s25 }
 0x985   : > { %1932 = dma.vmem_to_hbm [thread:$0]  (%p1946_p5), %s1655_s24, 32, %s1657_s25, [#allocation6]  }
 0x986   : > { %2249 = dma.done.wait (%p1946_p5), [#allocation6], 32  }
 0x987   : > { %2251 = vsyncadd (%p1946_p5), [#allocation6], 4294967264 }
 0x988 PF: > { %s2814_s21 = sld [smem:[#allocation21_spill]]  ;;  %s2817_s18 = smov %s2258_s19 }
 0x989   : > { %s2815_s0 = sld [smem:[#allocation20_spill]] }
 0x98a   : > { %s2816_s20 = sld [smem:[#allocation22_spill]] }
 0x98e   : > { %p29_p13 = scmp.ge.s32.totalorder %s2814_s21, 4  }
 0x98f   : > { %s2818_s19 = smov %s2815_s0 }
 0x990   :  { %31 = sbr.rel (!%p29_p13) target bundleno = 17 (0x11), region = 177 }
 0x995   :  { %1670 = vsyncpa [#allocation5], 1 }
 0x996   :  { %1672 = vsyncpa [#allocation5 + $0x1], 1 }
 0x997   :  { %1673 = vsyncpa [#allocation8], 1 }
 0x998   :  { %1675 = vsyncpa [#allocation8 + $0x1], 1 }
 0x999   :  { %1676 = vsyncpa [#allocation6], 1 }
 0x99a   :  { %1678 = vsyncpa [#allocation6 + $0x1], 1 }

</bundles_post_ra>
